<compile_context>
chip_gen: v5e
topology: v5e:2x2
jax: 0.10.0
libtpu: 0.0.40
codegen_flags: <defaults>
</compile_context>

<pallas_src>
import jax
import jax.numpy as jnp
from jax.experimental import pallas as pl
from jax.experimental.pallas import tpu as pltpu  # noqa: F401  (not required here)


# ----------------------------------------------------------------------------
# Row-packing helpers (wrapper-side layout plumbing; offsets are static ints).
# ----------------------------------------------------------------------------
def _rup(x, m):
    return ((x + m - 1) // m) * m


def _pack_offsets(row_counts, align):
    offs, r = [], 0
    for n in row_counts:
        offs.append(r)
        r += _rup(n, align)
    return offs, r


def _pack_rows(blocks, width, dtype):
    """Stack 2-D blocks row-wise (each placed at lane 0) into one (rows, width)
    array; row offsets aligned to the dtype's sublane tile."""
    align = 16 if dtype == jnp.bfloat16 else 8
    offs, total = _pack_offsets([int(b.shape[0]) for b in blocks], align)
    out = jnp.zeros((total, width), dtype)
    for off, b in zip(offs, blocks):
        out = out.at[off:off + b.shape[0], 0:b.shape[1]].set(b.astype(dtype))
    return out, offs


def _fuse_gru(pG, pS, pT, H, GP):
    """Fuse 3 GRUs into block-diagonal gate weights with lane-padded gate groups.

    Column layout (width 3*GP):  [ r_G r_S r_T pad | z_G z_S z_T pad | n_G n_S n_T pad ]
    Wih rows: [ g_seq (hRNN) ; sensor (inS) ; target (inT) ].
    Whh rows: [ hG (H) ; hS (H) ; hT (H) ; pad ]  (GP rows total).
    """
    f32 = jnp.float32
    parts = [pG, pS, pT]
    din_all = sum(int(p["wih"].shape[0]) for p in parts)
    wih = jnp.zeros((din_all, 3 * GP), f32)
    whh = jnp.zeros((GP, 3 * GP), f32)
    bih = jnp.zeros((1, 3 * GP), f32)
    bhh = jnp.zeros((1, 3 * GP), f32)
    roff = 0
    for k, p in enumerate(parts):
        d = int(p["wih"].shape[0])
        for g in range(3):                      # gate groups r | z | n
            c0 = g * GP + k * H
            wih = wih.at[roff:roff + d, c0:c0 + H].set(p["wih"][:, g * H:(g + 1) * H])
            whh = whh.at[k * H:(k + 1) * H, c0:c0 + H].set(p["whh"][:, g * H:(g + 1) * H])
            bih = bih.at[:, c0:c0 + H].set(p["bih"][:, g * H:(g + 1) * H])
            bhh = bhh.at[:, c0:c0 + H].set(p["bhh"][:, g * H:(g + 1) * H])
        roff += d
    return wih, whh, bih, bhh, din_all


# ----------------------------------------------------------------------------
# Kernel factory (dims / pack offsets are closed-over Python constants).
# ----------------------------------------------------------------------------
def _make_kernel(*, B, T, N, din, inS, inT, hGNN, hRNN, H, GP, Wh, din_all,
                 d_offs, w_offs, r_offs):
    G = T * B
    GN = G * N
    o_abd, o_sel, o_feat, o_x = d_offs
    o_w1, o_b1, o_w3, o_b3, o_fc1w, o_fc1b, o_hw, o_hb = w_offs
    o_whh, o_wih, o_bih, o_bhh = r_offs

    bf16, f32 = jnp.bfloat16, jnp.float32

    def mxu(a, b):  # bf16 operands, f32 accumulation
        return jnp.dot(a.astype(bf16), b.astype(bf16), preferred_element_type=f32)

    def kernel(data_ref, w128_ref, w9h_ref, out_ref):
        # ---------------- GNN: two wide MXU matmuls over all graphs at once ----
        feat = data_ref[o_feat:o_feat + GN, 0:din]                   # (GN, din)
        w1 = w128_ref[o_w1:o_w1 + din, 0:hGNN]
        b1 = w128_ref[o_b1:o_b1 + 1, 0:hGNN].astype(f32)
        p_all = mxu(feat, w1)                                        # (GN, hGNN)

        a_bd = data_ref[o_abd:o_abd + GN, 0:GN]                      # block-diag adjacency
        h1 = jnp.maximum(mxu(a_bd, p_all) + b1, 0.0)                 # (GN, hGNN)

        sel = data_ref[o_sel:o_sel + G, 0:GN]                        # node-0 aggregation rows
        z = mxu(sel, h1)                                             # (G, hGNN)

        w3 = w128_ref[o_w3:o_w3 + hGNN, 0:hRNN]
        b3 = w128_ref[o_b3:o_b3 + 1, 0:hRNN].astype(f32)
        g_seq = jnp.maximum(mxu(z, w3) + b3, 0.0)                    # (G, hRNN), t-major rows

        # -------- GRU input gates: all T steps x 3 GRUs in ONE matmul ----------
        x_st = data_ref[o_x:o_x + G, 0:(inS + inT)].astype(f32)      # sensor|target
        x_all = jnp.concatenate([g_seq, x_st], axis=1)               # (G, din_all)
        wih = w9h_ref[o_wih:o_wih + din_all, :]                      # (din_all, 3*GP)
        bih = w9h_ref[o_bih:o_bih + 1, :]
        gi_all = jnp.dot(x_all, wih, preferred_element_type=f32) + bih   # (G, 3*GP)

        # -------- Recurrence: one fused (B,GP)@(GP,3GP) matmul per step --------
        whh = w9h_ref[o_whh:o_whh + GP, :]                           # (GP, 3*GP)
        bhh = w9h_ref[o_bhh:o_bhh + 1, :]

        h = jnp.zeros((B, GP), f32)                                  # [hG|hS|hT|0-pad]
        hs = []
        for t in range(T):                                           # static unroll (T tiny)
            gi = gi_all[t * B:(t + 1) * B, :]
            gh = jnp.dot(h, whh, preferred_element_type=f32) + bhh
            r = jax.nn.sigmoid(gi[:, 0:GP] + gh[:, 0:GP])
            zg = jax.nn.sigmoid(gi[:, GP:2 * GP] + gh[:, GP:2 * GP])
            n = jnp.tanh(gi[:, 2 * GP:3 * GP] + r * gh[:, 2 * GP:3 * GP])
            h = (1.0 - zg) * n + zg * h
            hs.append(h)
        h_all = jnp.concatenate(hs, axis=0)                          # (G, GP), t-major

        # -------- FC head: linearFC1 + ReLU + fused (stimuli|cause) ------------
        fc1_w = w128_ref[o_fc1w:o_fc1w + GP, :]                      # (GP, Wh)
        fc1_b = w128_ref[o_fc1b:o_fc1b + 1, :].astype(f32)
        hfc = jnp.maximum(mxu(h_all, fc1_w) + fc1_b, 0.0)            # (G, Wh)

        hw = w128_ref[o_hw:o_hw + Wh, :]                             # (Wh, Wh)
        hb = w128_ref[o_hb:o_hb + 1, :].astype(f32)
        out_ref[...] = mxu(hfc, hw) + hb                             # lane-dense store

    return kernel


# ----------------------------------------------------------------------------
# Parameter construction (deterministic, matching module __init__ shapes).
# Weights stored transposed w.r.t. torch ((in, out)); GRU gate weights stored
# fused as (in, 3H) with gate column order r | z | n.
# ----------------------------------------------------------------------------
def xavier_uniform(key, shape, gain=1.0):
    fan_in, fan_out = shape
    bound = gain * (6.0 / (fan_in + fan_out)) ** 0.5
    return jax.random.uniform(key, shape, jnp.float32, -bound, bound)


def gru_params(key, din, h):
    k = 1.0 / (float(h) ** 0.5)
    k1, k2, k3, k4 = jax.random.split(key, 4)
    return dict(
        wih=jax.random.uniform(k1, (din, 3 * h), jnp.float32, -k, k),
        whh=jax.random.uniform(k2, (h, 3 * h), jnp.float32, -k, k),
        bih=jax.random.uniform(k3, (1, 3 * h), jnp.float32, -k, k),
        bhh=jax.random.uniform(k4, (1, 3 * h), jnp.float32, -k, k),
    )


def init_params(key, dims):
    (inGNN, inSensor, inTarget, hGNN, hFC, hRNN, outS, outC) = dims
    keys = jax.random.split(key, 12)
    relu_gain = 2.0 ** 0.5
    p = {}
    p["gnn1_w"] = xavier_uniform(keys[0], (inGNN, hGNN), relu_gain)
    p["gnn1_b"] = jnp.zeros((1, hGNN), jnp.float32)
    p["gnn3_w"] = xavier_uniform(keys[1], (hGNN, hRNN), relu_gain)
    p["gnn3_b"] = jnp.zeros((1, hRNN), jnp.float32)
    p["gruG"] = gru_params(keys[2], hRNN, hFC)
    p["gruS"] = gru_params(keys[3], inSensor, hFC)
    p["gruT"] = gru_params(keys[4], inTarget, hFC)
    p["fc1_w"] = xavier_uniform(keys[5], (3 * hFC, hFC), relu_gain)
    p["fc1_b"] = jnp.zeros((1, hFC), jnp.float32)
    p["stim_w"] = xavier_uniform(keys[6], (hFC, outS), relu_gain)
    p["stim_b"] = jnp.zeros((1, outS), jnp.float32)
    p["cause_w"] = xavier_uniform(keys[7], (hFC, outC), relu_gain)
    p["cause_b"] = jnp.zeros((1, outC), jnp.float32)
    return p


# ----------------------------------------------------------------------------
# Full forward (mirrors GNN_MLP_RNN_model.forward), one pallas_call, 3 operands.
# ----------------------------------------------------------------------------
def gnn_mlp_rnn_forward(params, bG_adj, bG_feat, bSensor, bTarget, bArea=None):
    del bArea  # accepted for API parity with torch; unused in forward()
    f32 = jnp.float32
    B, T, N, _ = bG_adj.shape
    din = bG_feat.shape[-1]
    inS = bSensor.shape[-1]
    inT = bTarget.shape[-1]
    hGNN = params["gnn1_w"].shape[1]
    hRNN = params["gnn3_w"].shape[1]
    H = params["gruG"]["whh"].shape[0]                 # hiddenDimFC
    outS = params["stim_w"].shape[1]
    outC = params["cause_w"].shape[1]

    G = T * B                                          # graph index g = t*B + b (time-major)
    GN = G * N
    GP = max(128, _rup(3 * H, 8))                      # lane-padded gate-group width
    Wh = max(128, hGNN, hRNN, H, outS + outC)          # lane width of w128 pack / output
    Wd = max(GN, din, inS + inT)                       # lane width of data pack

    # ---- Data pack: block-diag adjacency, node-0 selection, features, RNN inputs.
    adj_tb = jnp.transpose(bG_adj, (1, 0, 2, 3)).reshape(G, N, N).astype(f32)
    feat_tb = jnp.transpose(bG_feat, (1, 0, 2, 3)).reshape(GN, din).astype(f32)
    eyeG = jnp.eye(G, dtype=f32)
    a_bd = jnp.einsum('gij,gh->gihj', adj_tb, eyeG).reshape(GN, GN)   # block-diagonal A
    sel = jnp.einsum('gj,gh->ghj', adj_tb[:, 0, :], eyeG).reshape(G, GN)
    x_st = jnp.concatenate(
        [jnp.transpose(bSensor, (1, 0, 2)).reshape(G, inS),
         jnp.transpose(bTarget, (1, 0, 2)).reshape(G, inT)], axis=1).astype(f32)
    data_pack, d_offs = _pack_rows([a_bd, sel, feat_tb, x_st], Wd, jnp.bfloat16)

    # ---- Fused GRU weights (block-diag over the 3 GRUs, lane-padded gate groups).
    wih_f, whh_f, bih_f, bhh_f, din_all = _fuse_gru(
        params["gruG"], params["gruS"], params["gruT"], H, GP)
    w9h_pack, r_offs = _pack_rows([whh_f, wih_f, bih_f, bhh_f], 3 * GP, f32)

    # ---- 128-lane weight pack: GNN weights + FC head (stimuli|cause fused, padded).
    fc1_w_p = jnp.zeros((GP, H), f32).at[0:3 * H, :].set(params["fc1_w"])
    head_w = jnp.concatenate([params["stim_w"], params["cause_w"]], axis=1)
    head_b = jnp.concatenate([params["stim_b"], params["cause_b"]], axis=1)
    head_w_p = jnp.zeros((Wh, outS + outC), f32).at[0:H, :].set(head_w)
    w128_pack, w_offs = _pack_rows(
        [params["gnn1_w"], params["gnn1_b"], params["gnn3_w"], params["gnn3_b"],
         fc1_w_p, params["fc1_b"], head_w_p, head_b], Wh, jnp.bfloat16)

    kernel = _make_kernel(B=B, T=T, N=N, din=din, inS=inS, inT=inT,
                          hGNN=hGNN, hRNN=hRNN, H=H, GP=GP, Wh=Wh,
                          din_all=din_all, d_offs=d_offs, w_offs=w_offs,
                          r_offs=r_offs)

    out = pl.pallas_call(
        kernel,
        out_shape=jax.ShapeDtypeStruct((G, Wh), f32),
    )(data_pack, w128_pack, w9h_pack)

    # t-major rows -> torch row order m = b*T + t (free XLA plumbing), then split.
    out_bt = jnp.transpose(out.reshape(T, B, Wh), (1, 0, 2)).reshape(B * T, Wh)
    hStimuli = out_bt[:, :outS]
    hCause = out_bt[:, outS:outS + outC]
    return hStimuli, hCause


# ----------------------------------------------------------------------------
if __name__ == "__main__":
    # Small, forward-consistent dimensions (B*T*N = 128 fills one MXU tile).
    B, T, N = 4, 4, 8
    inputDimGNN, inputDimSensor, inputDimTarget = 8, 6, 5
    hiddenDimGNN, hiddenDimFC, hiddenDimRNN = 16, 32, 16
    outputDimStimuli, outputDimClause = 4, 3

    key = jax.random.PRNGKey(0)
    kp, ka, kf, ks, kt = jax.random.split(key, 5)

    params = init_params(
        kp, (inputDimGNN, inputDimSensor, inputDimTarget,
             hiddenDimGNN, hiddenDimFC, hiddenDimRNN,
             outputDimStimuli, outputDimClause))

    # Dense adjacency with self-loops, row-normalized.
    adj_raw = (jax.random.uniform(ka, (B, T, N, N)) > 0.5).astype(jnp.float32)
    adj_raw = adj_raw + jnp.eye(N, dtype=jnp.float32)[None, None]
    adj = adj_raw / jnp.sum(adj_raw, axis=-1, keepdims=True)

    feat = jax.random.normal(kf, (B, T, N, inputDimGNN), jnp.float32)
    bSensor = jax.random.normal(ks, (B, T, inputDimSensor), jnp.float32)
    bTarget = jax.random.normal(kt, (B, T, inputDimTarget), jnp.float32)

    fwd = jax.jit(gnn_mlp_rnn_forward)
    hStimuli, hCause = fwd(params, adj, feat, bSensor, bTarget)
    jax.block_until_ready((hStimuli, hCause))

    assert hStimuli.shape == (B * T, outputDimStimuli)
    assert hCause.shape == (B * T, outputDimClause)
    assert bool(jnp.all(jnp.isfinite(hStimuli))) and bool(jnp.all(jnp.isfinite(hCause)))
    print("KERNEL_OK")
</pallas_src>

<mosaic_0001>
module attributes {stable_mosaic.version = 11 : i64} {
  func.func @kernel(%arg0: memref<288x128xbf16, #tpu.memory_space<vmem>>, %arg1: memref<352x128xbf16, #tpu.memory_space<vmem>>, %arg2: memref<176x384xf32, #tpu.memory_space<vmem>>, %arg3: memref<16x128xf32, #tpu.memory_space<vmem>>) attributes {dimension_semantics = [], scalar_prefetch = 0 : i64, scratch_operands = 0 : i64, tpu.core_type = #tpu.core_type<tc>} {
    %c144 = arith.constant 144 : index
    %c0 = arith.constant 0 : index
    %0 = vector.load %arg0[%c144, %c0] : memref<288x128xbf16, #tpu.memory_space<vmem>>, vector<128x8xbf16>
    %c0_0 = arith.constant 0 : index
    %c0_1 = arith.constant 0 : index
    %1 = vector.load %arg1[%c0_0, %c0_1] : memref<352x128xbf16, #tpu.memory_space<vmem>>, vector<8x16xbf16>
    %c16 = arith.constant 16 : index
    %c0_2 = arith.constant 0 : index
    %2 = vector.load %arg1[%c16, %c0_2] : memref<352x128xbf16, #tpu.memory_space<vmem>>, vector<1x16xbf16>
    %3 = arith.extf %2 : vector<1x16xbf16> to vector<1x16xf32>
    %cst = arith.constant dense<0.000000e+00> : vector<128x16xf32>
    %4 = tpu.matmul %0, %1, %cst {dimension_numbers = #tpu.dot_dimension_numbers<[1], [0], [0], [1], [0, 0, 1, 1], [], []>} : vector<128x8xbf16>, vector<8x16xbf16>, vector<128x16xf32> -> vector<128x16xf32>
    %c0_3 = arith.constant 0 : index
    %c0_4 = arith.constant 0 : index
    %5 = vector.load %arg0[%c0_3, %c0_4] : memref<288x128xbf16, #tpu.memory_space<vmem>>, vector<128x128xbf16>
    %6 = arith.truncf %4 : vector<128x16xf32> to vector<128x16xbf16>
    %cst_5 = arith.constant dense<0.000000e+00> : vector<128x16xf32>
    %7 = tpu.matmul %5, %6, %cst_5 {dimension_numbers = #tpu.dot_dimension_numbers<[1], [0], [0], [1], [0, 0, 1, 1], [], []>} : vector<128x128xbf16>, vector<128x16xbf16>, vector<128x16xf32> -> vector<128x16xf32>
    %8 = vector.broadcast %3 : vector<1x16xf32> to vector<128x16xf32>
    %9 = arith.addf %7, %8 : vector<128x16xf32>
    %cst_6 = arith.constant 0.000000e+00 : f32
    %10 = vector.broadcast %cst_6 : f32 to vector<128x16xf32>
    %11 = arith.maximumf %9, %10 : vector<128x16xf32>
    %c128 = arith.constant 128 : index
    %c0_7 = arith.constant 0 : index
    %12 = vector.load %arg0[%c128, %c0_7] : memref<288x128xbf16, #tpu.memory_space<vmem>>, vector<16x128xbf16>
    %13 = arith.truncf %11 : vector<128x16xf32> to vector<128x16xbf16>
    %cst_8 = arith.constant dense<0.000000e+00> : vector<16x16xf32>
    %14 = tpu.matmul %12, %13, %cst_8 {dimension_numbers = #tpu.dot_dimension_numbers<[1], [0], [0], [1], [0, 0, 1, 1], [], []>} : vector<16x128xbf16>, vector<128x16xbf16>, vector<16x16xf32> -> vector<16x16xf32>
    %c32 = arith.constant 32 : index
    %c0_9 = arith.constant 0 : index
    %15 = vector.load %arg1[%c32, %c0_9] : memref<352x128xbf16, #tpu.memory_space<vmem>>, vector<16x16xbf16>
    %c48 = arith.constant 48 : index
    %c0_10 = arith.constant 0 : index
    %16 = vector.load %arg1[%c48, %c0_10] : memref<352x128xbf16, #tpu.memory_space<vmem>>, vector<1x16xbf16>
    %17 = arith.extf %16 : vector<1x16xbf16> to vector<1x16xf32>
    %18 = arith.truncf %14 : vector<16x16xf32> to vector<16x16xbf16>
    %cst_11 = arith.constant dense<0.000000e+00> : vector<16x16xf32>
    %19 = tpu.matmul %18, %15, %cst_11 {dimension_numbers = #tpu.dot_dimension_numbers<[1], [0], [0], [1], [0, 0, 1, 1], [], []>} : vector<16x16xbf16>, vector<16x16xbf16>, vector<16x16xf32> -> vector<16x16xf32>
    %20 = vector.broadcast %17 : vector<1x16xf32> to vector<16x16xf32>
    %21 = arith.addf %19, %20 : vector<16x16xf32>
    %cst_12 = arith.constant 0.000000e+00 : f32
    %22 = vector.broadcast %cst_12 : f32 to vector<16x16xf32>
    %23 = arith.maximumf %21, %22 : vector<16x16xf32>
    %c272 = arith.constant 272 : index
    %c0_13 = arith.constant 0 : index
    %24 = vector.load %arg0[%c272, %c0_13] : memref<288x128xbf16, #tpu.memory_space<vmem>>, vector<16x11xbf16>
    %25 = arith.extf %24 : vector<16x11xbf16> to vector<16x11xf32>
    %26 = tpu.concatenate %23, %25 in 1 : vector<16x16xf32>, vector<16x11xf32> -> vector<16x27xf32>
    %c128_14 = arith.constant 128 : index
    %c0_15 = arith.constant 0 : index
    %27 = vector.load %arg2[%c128_14, %c0_15] : memref<176x384xf32, #tpu.memory_space<vmem>>, vector<27x384xf32>
    %c160 = arith.constant 160 : index
    %c0_16 = arith.constant 0 : index
    %28 = vector.load %arg2[%c160, %c0_16] : memref<176x384xf32, #tpu.memory_space<vmem>>, vector<1x384xf32>
    %cst_17 = arith.constant dense<0.000000e+00> : vector<16x384xf32>
    %29 = tpu.matmul %26, %27, %cst_17 {dimension_numbers = #tpu.dot_dimension_numbers<[1], [0], [0], [1], [0, 0, 1, 1], [], []>} : vector<16x27xf32>, vector<27x384xf32>, vector<16x384xf32> -> vector<16x384xf32>
    %30 = vector.broadcast %28 : vector<1x384xf32> to vector<16x384xf32>
    %31 = arith.addf %29, %30 : vector<16x384xf32>
    %c0_18 = arith.constant 0 : index
    %c0_19 = arith.constant 0 : index
    %32 = vector.load %arg2[%c0_18, %c0_19] : memref<176x384xf32, #tpu.memory_space<vmem>>, vector<128x384xf32>
    %c168 = arith.constant 168 : index
    %c0_20 = arith.constant 0 : index
    %33 = vector.load %arg2[%c168, %c0_20] : memref<176x384xf32, #tpu.memory_space<vmem>>, vector<1x384xf32>
    %cst_21 = arith.constant 0.000000e+00 : f32
    %34 = vector.broadcast %cst_21 : f32 to vector<4x128xf32>
    %35 = vector.extract_strided_slice %31 {offsets = [0, 0], sizes = [4, 384], strides = [1, 1]} : vector<16x384xf32> to vector<4x384xf32>
    %cst_22 = arith.constant dense<0.000000e+00> : vector<4x384xf32>
    %36 = tpu.matmul %34, %32, %cst_22 {dimension_numbers = #tpu.dot_dimension_numbers<[1], [0], [0], [1], [0, 0, 1, 1], [], []>} : vector<4x128xf32>, vector<128x384xf32>, vector<4x384xf32> -> vector<4x384xf32>
    %37 = vector.broadcast %33 : vector<1x384xf32> to vector<4x384xf32>
    %38 = arith.addf %36, %37 : vector<4x384xf32>
    %39 = vector.extract_strided_slice %35 {offsets = [0, 0], sizes = [4, 128], strides = [1, 1]} : vector<4x384xf32> to vector<4x128xf32>
    %40 = vector.extract_strided_slice %38 {offsets = [0, 0], sizes = [4, 128], strides = [1, 1]} : vector<4x384xf32> to vector<4x128xf32>
    %41 = arith.addf %39, %40 : vector<4x128xf32>
    %42 = arith.negf %41 : vector<4x128xf32>
    %43 = math.exp %42 : vector<4x128xf32>
    %cst_23 = arith.constant 1.000000e+00 : f32
    %44 = vector.broadcast %cst_23 : f32 to vector<4x128xf32>
    %45 = arith.addf %44, %43 : vector<4x128xf32>
    %46 = arith.divf %44, %45 : vector<4x128xf32>
    %47 = vector.extract_strided_slice %35 {offsets = [0, 128], sizes = [4, 128], strides = [1, 1]} : vector<4x384xf32> to vector<4x128xf32>
    %48 = vector.extract_strided_slice %38 {offsets = [0, 128], sizes = [4, 128], strides = [1, 1]} : vector<4x384xf32> to vector<4x128xf32>
    %49 = arith.addf %47, %48 : vector<4x128xf32>
    %50 = arith.negf %49 : vector<4x128xf32>
    %51 = math.exp %50 : vector<4x128xf32>
    %cst_24 = arith.constant 1.000000e+00 : f32
    %52 = vector.broadcast %cst_24 : f32 to vector<4x128xf32>
    %53 = arith.addf %52, %51 : vector<4x128xf32>
    %54 = arith.divf %52, %53 : vector<4x128xf32>
    %55 = vector.extract_strided_slice %35 {offsets = [0, 256], sizes = [4, 128], strides = [1, 1]} : vector<4x384xf32> to vector<4x128xf32>
    %56 = vector.extract_strided_slice %38 {offsets = [0, 256], sizes = [4, 128], strides = [1, 1]} : vector<4x384xf32> to vector<4x128xf32>
    %57 = arith.mulf %46, %56 : vector<4x128xf32>
    %58 = arith.addf %55, %57 : vector<4x128xf32>
    %59 = math.tanh %58 : vector<4x128xf32>
    %cst_25 = arith.constant 1.000000e+00 : f32
    %60 = vector.broadcast %cst_25 : f32 to vector<4x128xf32>
    %61 = arith.subf %60, %54 : vector<4x128xf32>
    %62 = arith.mulf %61, %59 : vector<4x128xf32>
    %63 = arith.mulf %54, %34 : vector<4x128xf32>
    %64 = arith.addf %62, %63 : vector<4x128xf32>
    %65 = vector.extract_strided_slice %31 {offsets = [4, 0], sizes = [4, 384], strides = [1, 1]} : vector<16x384xf32> to vector<4x384xf32>
    %cst_26 = arith.constant dense<0.000000e+00> : vector<4x384xf32>
    %66 = tpu.matmul %64, %32, %cst_26 {dimension_numbers = #tpu.dot_dimension_numbers<[1], [0], [0], [1], [0, 0, 1, 1], [], []>} : vector<4x128xf32>, vector<128x384xf32>, vector<4x384xf32> -> vector<4x384xf32>
    %67 = vector.broadcast %33 : vector<1x384xf32> to vector<4x384xf32>
    %68 = arith.addf %66, %67 : vector<4x384xf32>
    %69 = vector.extract_strided_slice %65 {offsets = [0, 0], sizes = [4, 128], strides = [1, 1]} : vector<4x384xf32> to vector<4x128xf32>
    %70 = vector.extract_strided_slice %68 {offsets = [0, 0], sizes = [4, 128], strides = [1, 1]} : vector<4x384xf32> to vector<4x128xf32>
    %71 = arith.addf %69, %70 : vector<4x128xf32>
    %72 = arith.negf %71 : vector<4x128xf32>
    %73 = math.exp %72 : vector<4x128xf32>
    %cst_27 = arith.constant 1.000000e+00 : f32
    %74 = vector.broadcast %cst_27 : f32 to vector<4x128xf32>
    %75 = arith.addf %74, %73 : vector<4x128xf32>
    %76 = arith.divf %74, %75 : vector<4x128xf32>
    %77 = vector.extract_strided_slice %65 {offsets = [0, 128], sizes = [4, 128], strides = [1, 1]} : vector<4x384xf32> to vector<4x128xf32>
    %78 = vector.extract_strided_slice %68 {offsets = [0, 128], sizes = [4, 128], strides = [1, 1]} : vector<4x384xf32> to vector<4x128xf32>
    %79 = arith.addf %77, %78 : vector<4x128xf32>
    %80 = arith.negf %79 : vector<4x128xf32>
    %81 = math.exp %80 : vector<4x128xf32>
    %cst_28 = arith.constant 1.000000e+00 : f32
    %82 = vector.broadcast %cst_28 : f32 to vector<4x128xf32>
    %83 = arith.addf %82, %81 : vector<4x128xf32>
    %84 = arith.divf %82, %83 : vector<4x128xf32>
    %85 = vector.extract_strided_slice %65 {offsets = [0, 256], sizes = [4, 128], strides = [1, 1]} : vector<4x384xf32> to vector<4x128xf32>
    %86 = vector.extract_strided_slice %68 {offsets = [0, 256], sizes = [4, 128], strides = [1, 1]} : vector<4x384xf32> to vector<4x128xf32>
    %87 = arith.mulf %76, %86 : vector<4x128xf32>
    %88 = arith.addf %85, %87 : vector<4x128xf32>
    %89 = math.tanh %88 : vector<4x128xf32>
    %cst_29 = arith.constant 1.000000e+00 : f32
    %90 = vector.broadcast %cst_29 : f32 to vector<4x128xf32>
    %91 = arith.subf %90, %84 : vector<4x128xf32>
    %92 = arith.mulf %91, %89 : vector<4x128xf32>
    %93 = arith.mulf %84, %64 : vector<4x128xf32>
    %94 = arith.addf %92, %93 : vector<4x128xf32>
    %95 = vector.extract_strided_slice %31 {offsets = [8, 0], sizes = [4, 384], strides = [1, 1]} : vector<16x384xf32> to vector<4x384xf32>
    %cst_30 = arith.constant dense<0.000000e+00> : vector<4x384xf32>
    %96 = tpu.matmul %94, %32, %cst_30 {dimension_numbers = #tpu.dot_dimension_numbers<[1], [0], [0], [1], [0, 0, 1, 1], [], []>} : vector<4x128xf32>, vector<128x384xf32>, vector<4x384xf32> -> vector<4x384xf32>
    %97 = vector.broadcast %33 : vector<1x384xf32> to vector<4x384xf32>
    %98 = arith.addf %96, %97 : vector<4x384xf32>
    %99 = vector.extract_strided_slice %95 {offsets = [0, 0], sizes = [4, 128], strides = [1, 1]} : vector<4x384xf32> to vector<4x128xf32>
    %100 = vector.extract_strided_slice %98 {offsets = [0, 0], sizes = [4, 128], strides = [1, 1]} : vector<4x384xf32> to vector<4x128xf32>
    %101 = arith.addf %99, %100 : vector<4x128xf32>
    %102 = arith.negf %101 : vector<4x128xf32>
    %103 = math.exp %102 : vector<4x128xf32>
    %cst_31 = arith.constant 1.000000e+00 : f32
    %104 = vector.broadcast %cst_31 : f32 to vector<4x128xf32>
    %105 = arith.addf %104, %103 : vector<4x128xf32>
    %106 = arith.divf %104, %105 : vector<4x128xf32>
    %107 = vector.extract_strided_slice %95 {offsets = [0, 128], sizes = [4, 128], strides = [1, 1]} : vector<4x384xf32> to vector<4x128xf32>
    %108 = vector.extract_strided_slice %98 {offsets = [0, 128], sizes = [4, 128], strides = [1, 1]} : vector<4x384xf32> to vector<4x128xf32>
    %109 = arith.addf %107, %108 : vector<4x128xf32>
    %110 = arith.negf %109 : vector<4x128xf32>
    %111 = math.exp %110 : vector<4x128xf32>
    %cst_32 = arith.constant 1.000000e+00 : f32
    %112 = vector.broadcast %cst_32 : f32 to vector<4x128xf32>
    %113 = arith.addf %112, %111 : vector<4x128xf32>
    %114 = arith.divf %112, %113 : vector<4x128xf32>
    %115 = vector.extract_strided_slice %95 {offsets = [0, 256], sizes = [4, 128], strides = [1, 1]} : vector<4x384xf32> to vector<4x128xf32>
    %116 = vector.extract_strided_slice %98 {offsets = [0, 256], sizes = [4, 128], strides = [1, 1]} : vector<4x384xf32> to vector<4x128xf32>
    %117 = arith.mulf %106, %116 : vector<4x128xf32>
    %118 = arith.addf %115, %117 : vector<4x128xf32>
    %119 = math.tanh %118 : vector<4x128xf32>
    %cst_33 = arith.constant 1.000000e+00 : f32
    %120 = vector.broadcast %cst_33 : f32 to vector<4x128xf32>
    %121 = arith.subf %120, %114 : vector<4x128xf32>
    %122 = arith.mulf %121, %119 : vector<4x128xf32>
    %123 = arith.mulf %114, %94 : vector<4x128xf32>
    %124 = arith.addf %122, %123 : vector<4x128xf32>
    %125 = vector.extract_strided_slice %31 {offsets = [12, 0], sizes = [4, 384], strides = [1, 1]} : vector<16x384xf32> to vector<4x384xf32>
    %cst_34 = arith.constant dense<0.000000e+00> : vector<4x384xf32>
    %126 = tpu.matmul %124, %32, %cst_34 {dimension_numbers = #tpu.dot_dimension_numbers<[1], [0], [0], [1], [0, 0, 1, 1], [], []>} : vector<4x128xf32>, vector<128x384xf32>, vector<4x384xf32> -> vector<4x384xf32>
    %127 = vector.broadcast %33 : vector<1x384xf32> to vector<4x384xf32>
    %128 = arith.addf %126, %127 : vector<4x384xf32>
    %129 = vector.extract_strided_slice %125 {offsets = [0, 0], sizes = [4, 128], strides = [1, 1]} : vector<4x384xf32> to vector<4x128xf32>
    %130 = vector.extract_strided_slice %128 {offsets = [0, 0], sizes = [4, 128], strides = [1, 1]} : vector<4x384xf32> to vector<4x128xf32>
    %131 = arith.addf %129, %130 : vector<4x128xf32>
    %132 = arith.negf %131 : vector<4x128xf32>
    %133 = math.exp %132 : vector<4x128xf32>
    %cst_35 = arith.constant 1.000000e+00 : f32
    %134 = vector.broadcast %cst_35 : f32 to vector<4x128xf32>
    %135 = arith.addf %134, %133 : vector<4x128xf32>
    %136 = arith.divf %134, %135 : vector<4x128xf32>
    %137 = vector.extract_strided_slice %125 {offsets = [0, 128], sizes = [4, 128], strides = [1, 1]} : vector<4x384xf32> to vector<4x128xf32>
    %138 = vector.extract_strided_slice %128 {offsets = [0, 128], sizes = [4, 128], strides = [1, 1]} : vector<4x384xf32> to vector<4x128xf32>
    %139 = arith.addf %137, %138 : vector<4x128xf32>
    %140 = arith.negf %139 : vector<4x128xf32>
    %141 = math.exp %140 : vector<4x128xf32>
    %cst_36 = arith.constant 1.000000e+00 : f32
    %142 = vector.broadcast %cst_36 : f32 to vector<4x128xf32>
    %143 = arith.addf %142, %141 : vector<4x128xf32>
    %144 = arith.divf %142, %143 : vector<4x128xf32>
    %145 = vector.extract_strided_slice %125 {offsets = [0, 256], sizes = [4, 128], strides = [1, 1]} : vector<4x384xf32> to vector<4x128xf32>
    %146 = vector.extract_strided_slice %128 {offsets = [0, 256], sizes = [4, 128], strides = [1, 1]} : vector<4x384xf32> to vector<4x128xf32>
    %147 = arith.mulf %136, %146 : vector<4x128xf32>
    %148 = arith.addf %145, %147 : vector<4x128xf32>
    %149 = math.tanh %148 : vector<4x128xf32>
    %cst_37 = arith.constant 1.000000e+00 : f32
    %150 = vector.broadcast %cst_37 : f32 to vector<4x128xf32>
    %151 = arith.subf %150, %144 : vector<4x128xf32>
    %152 = arith.mulf %151, %149 : vector<4x128xf32>
    %153 = arith.mulf %144, %124 : vector<4x128xf32>
    %154 = arith.addf %152, %153 : vector<4x128xf32>
    %155 = tpu.concatenate %64, %94, %124, %154 in 0 : vector<4x128xf32>, vector<4x128xf32>, vector<4x128xf32>, vector<4x128xf32> -> vector<16x128xf32>
    %c64 = arith.constant 64 : index
    %c0_38 = arith.constant 0 : index
    %156 = vector.load %arg1[%c64, %c0_38] : memref<352x128xbf16, #tpu.memory_space<vmem>>, vector<128x128xbf16>
    %c192 = arith.constant 192 : index
    %c0_39 = arith.constant 0 : index
    %157 = vector.load %arg1[%c192, %c0_39] : memref<352x128xbf16, #tpu.memory_space<vmem>>, vector<1x128xbf16>
    %158 = arith.extf %157 : vector<1x128xbf16> to vector<1x128xf32>
    %159 = arith.truncf %155 : vector<16x128xf32> to vector<16x128xbf16>
    %cst_40 = arith.constant dense<0.000000e+00> : vector<16x128xf32>
    %160 = tpu.matmul %159, %156, %cst_40 {dimension_numbers = #tpu.dot_dimension_numbers<[1], [0], [0], [1], [0, 0, 1, 1], [], []>} : vector<16x128xbf16>, vector<128x128xbf16>, vector<16x128xf32> -> vector<16x128xf32>
    %161 = vector.broadcast %158 : vector<1x128xf32> to vector<16x128xf32>
    %162 = arith.addf %160, %161 : vector<16x128xf32>
    %cst_41 = arith.constant 0.000000e+00 : f32
    %163 = vector.broadcast %cst_41 : f32 to vector<16x128xf32>
    %164 = arith.maximumf %162, %163 : vector<16x128xf32>
    %c208 = arith.constant 208 : index
    %c0_42 = arith.constant 0 : index
    %165 = vector.load %arg1[%c208, %c0_42] : memref<352x128xbf16, #tpu.memory_space<vmem>>, vector<128x128xbf16>
    %c336 = arith.constant 336 : index
    %c0_43 = arith.constant 0 : index
    %166 = vector.load %arg1[%c336, %c0_43] : memref<352x128xbf16, #tpu.memory_space<vmem>>, vector<1x128xbf16>
    %167 = arith.extf %166 : vector<1x128xbf16> to vector<1x128xf32>
    %168 = arith.truncf %164 : vector<16x128xf32> to vector<16x128xbf16>
    %cst_44 = arith.constant dense<0.000000e+00> : vector<16x128xf32>
    %169 = tpu.matmul %168, %165, %cst_44 {dimension_numbers = #tpu.dot_dimension_numbers<[1], [0], [0], [1], [0, 0, 1, 1], [], []>} : vector<16x128xbf16>, vector<128x128xbf16>, vector<16x128xf32> -> vector<16x128xf32>
    %170 = vector.broadcast %167 : vector<1x128xf32> to vector<16x128xf32>
    %171 = arith.addf %169, %170 : vector<16x128xf32>
    %c0_45 = arith.constant 0 : index
    %c0_46 = arith.constant 0 : index
    %172 = vector.load %arg3[%c0_45, %c0_46] : memref<16x128xf32, #tpu.memory_space<vmem>>, vector<16x128xf32>
    tpu.vector_store %arg3[%c0_45, %c0_46], %171 {strides = array<i32>} : memref<16x128xf32, #tpu.memory_space<vmem>>, vector<16x128xf32>,
    return
  }
}

</mosaic_0001>

<bundles_post_ra>
// kernel: gnn_mlp_rnn_forward.1
= control target key start
LH: loop header
LB: loop body
LE: loop exit
PB: predicated region body
PF: predicated region fallthrough
CT: control target
= control target key end

     0   :  { %vm99_vm0 = vcmask 1043456   ;;  %vm74_vm1 = vcmask 64512   ;;  %vm394_vm2 = vcmask 1042432   ;;  %s1404_s9 = smov 16   ;;  %vm332_vm3 = vcmask 130048   ;;  %s2080_s1 = inlined_call_operand.vmem [shape: bf16[352,128], index: 1, kind: input, shape index: {}]   ;;  %s2081_s0 = inlined_call_operand.vmem [shape: bf16[288,128], index: 0, kind: input, shape index: {}]   ;;  %s2082_s2 = inlined_call_operand.vmem [shape: f32[176,384], index: 2, kind: input, shape index: {}]   ;;  %s2083_s3 = inlined_call_operand.vmem [shape: f32[16,128], index: 3, kind: output, shape index: {}]  }
   0x1   :  { %v31_v0 = vld [vmem:[%s2080_s1] sm:$0xf]  ;;  %v1323_v2 = vld [vmem:[%s2081_s0 + $0x48] sm:$0xff]  ;;  %v1324_v3 = vld [vmem:[%s2081_s0 + $0x50] sm:$0xff]  ;;  %vm387_vm4 = vcmask 220160  }
   0x2   :  { %v101_v1 = vsel %vm99_vm0, %v31_v0, 0  ;;  %v1325_v4 = vld [vmem:[%s2081_s0 + $0x58] sm:$0xff]  ;;  %v1326_v5 = vld [vmem:[%s2081_s0 + $0x60] sm:$0xff]  ;;  %v1327_v6 = vld [vmem:[%s2081_s0 + $0x68] sm:$0xff] }
   0x3   :  { %110 = vmatpush.bf16.msra.mxu0 %v101_v1  ;;  %v1328_v7 = vld [vmem:[%s2081_s0 + $0x70] sm:$0xff]  ;;  %v1329_v8 = vld [vmem:[%s2081_s0 + $0x78] sm:$0xff]  ;;  %v1330_v9 = vld [vmem:[%s2081_s0 + $0x80] sm:$0xff] }
   0x4   :  { %v1331_v34 = vld [vmem:[%s2081_s0] sm:$0xff]  ;;  %v1332_v35 = vld [vmem:[%s2081_s0 + $0x8] sm:$0xff]  ;;  %v1333_v36 = vld [vmem:[%s2081_s0 + $0x10] sm:$0xff] }
   0x5   :  { %v1334_v37 = vld [vmem:[%s2081_s0 + $0x18] sm:$0xff]  ;;  %v1335_v38 = vld [vmem:[%s2081_s0 + $0x20] sm:$0xff]  ;;  %v1336_v39 = vld [vmem:[%s2081_s0 + $0x28] sm:$0xff] }
   0x6   :  { %1191 = vmatmul.msk.bf16.vlgmr.msra.gmra.mxu0 %vm74_vm1, %v1323_v2  ;;  %v1337_v40 = vld [vmem:[%s2081_s0 + $0x30] sm:$0xff]  ;;  %v1338_v41 = vld [vmem:[%s2081_s0 + $0x38] sm:$0xff]  ;;  %v32_v42 = vld [vmem:[%s2080_s1 + $0x8] sm:$0x1] }
   0x7   :  { %v33_v43 = vunpack.c.l.bf16 %v32_v42 }
   0x9   :  { %v176_v45 = vperm.slane %v33_v43, 0  ;;  %v375_v43 = vld [vmem:[%s2082_s2 + $0x1c8] sm:$0x7] }
  0x16   :  { %1192 = vmatmul.msk.bf16.gmra.mxu0 %vm74_vm1, %v1324_v3 }
  0x26   :  { %1193 = vmatmul.msk.bf16.gmra.mxu0 %vm74_vm1, %v1325_v4 }
  0x36   :  { %1194 = vmatmul.msk.bf16.gmra.mxu0 %vm74_vm1, %v1326_v5 }
  0x46   :  { %1195 = vmatmul.msk.bf16.gmra.mxu0 %vm74_vm1, %v1327_v6 }
  0x56   :  { %1196 = vmatmul.msk.bf16.gmra.mxu0 %vm74_vm1, %v1328_v7 }
  0x66   :  { %1197 = vmatmul.msk.bf16.gmra.mxu0 %vm74_vm1, %v1329_v8 }
  0x76   :  { %1198 = vmatmul.msk.bf16.gmra.mxu0 %vm74_vm1, %v1330_v9 }
  0x83   :  { %v112_v10 = vpop.f32.mrf.mxu0 }
  0x8b   :  { %v114_v11 = vpop.f32.mrf.mxu0 }
  0x8c   :  { %v168_v12 = vpack.c.bf16 %v114_v11, %v112_v10 }
  0x93   :  { %v117_v13 = vpop.f32.mrf.mxu0 }
  0x9b   :  { %v119_v14 = vpop.f32.mrf.mxu0 }
  0x9c   :  { %v169_v15 = vpack.c.bf16 %v119_v14, %v117_v13 }
  0xa3   :  { %v122_v16 = vpop.f32.mrf.mxu0 }
  0xab   :  { %v124_v17 = vpop.f32.mrf.mxu0 }
  0xac   :  { %v170_v18 = vpack.c.bf16 %v124_v17, %v122_v16 }
  0xb3   :  { %v127_v19 = vpop.f32.mrf.mxu0 }
  0xbb   :  { %v129_v20 = vpop.f32.mrf.mxu0 }
  0xbc   :  { %v171_v21 = vpack.c.bf16 %v129_v20, %v127_v19 }
  0xc3   :  { %v132_v22 = vpop.f32.mrf.mxu0 }
  0xcb   :  { %v134_v23 = vpop.f32.mrf.mxu0 }
  0xcc   :  { %v172_v33 = vpack.c.bf16 %v134_v23, %v132_v22 }
  0xd3   :  { %v137_v24 = vpop.f32.mrf.mxu0 }
  0xdb   :  { %v139_v25 = vpop.f32.mrf.mxu0 }
  0xdc   :  { %v173_v32 = vpack.c.bf16 %v139_v25, %v137_v24 }
  0xe3   :  { %v142_v26 = vpop.f32.mrf.mxu0 }
  0xeb   :  { %v144_v27 = vpop.f32.mrf.mxu0 }
  0xec   :  { %v174_v31 = vpack.c.bf16 %v144_v27, %v142_v26 }
  0xf3   :  { %v147_v28 = vpop.f32.mrf.mxu0 }
  0xfb   :  { %v149_v29 = vpop.f32.mrf.mxu0 }
  0xfc   :  { %v175_v30 = vpack.c.bf16 %v149_v29, %v147_v28 }
  0xfe   :  { %225 = vmatpush.bf16.msra.mxu1 %v175_v30 }
 0x102   :  { %226 = vmatpush.bf16.msra.mxu1 %v174_v31 }
 0x106   :  { %227 = vmatpush.bf16.msra.mxu1 %v173_v32 }
 0x10a   :  { %228 = vmatpush.bf16.msra.mxu1 %v172_v33 }
 0x10e   :  { %229 = vmatpush.bf16.msra.mxu1 %v171_v21 }
 0x112   :  { %230 = vmatpush.bf16.msra.mxu1 %v170_v18 }
 0x116   :  { %231 = vmatpush.bf16.msra.mxu1 %v169_v15 }
 0x11a   :  { %232 = vmatpush.bf16.msra.mxu1 %v168_v12 }
 0x11d   :  { %233 = vmatmul.bf16.vlgmr.msra.gmra.mxu1 %v1331_v34 }
 0x12d   :  { %238 = vmatmul.bf16.gmra.mxu1 %v1332_v35 }
 0x13d   :  { %243 = vmatmul.bf16.gmra.mxu1 %v1333_v36 }
 0x14d   :  { %248 = vmatmul.bf16.gmra.mxu1 %v1334_v37  ;;  %v1339_v37 = vld [vmem:[%s2081_s0 + $0x40] sm:$0xff] }
 0x15d   :  { %253 = vmatmul.bf16.gmra.mxu1 %v1335_v38  ;;  %v1340_v38 = vld [vmem:[%s2080_s1 + $0x10] sm:$0xff] }
 0x15e   :  { %343 = vmatpush.bf16.msra.mxu3 %v1340_v38  ;;  %v1775_v38 = vld [vmem:[%s2082_s2 + $0x90] sm:$0xff] }
 0x162   :  { %1241 = vmatpush.msk.msrb.mxu3 %vm394_vm2, %v375_v43  ;;  %v1809_v43 = vld [vmem:[%s2082_s2 + $0xb8] sm:$0xff] }
 0x16d   :  { %258 = vmatmul.bf16.gmra.mxu1 %v1336_v39  ;;  %v1361_v39 = vld [vmem:[%s2081_s0 + $0x88] sm:$0xff]  }
 0x16e   :  { %v1359_v42 = vunpack.c.l.bf16 %v1361_v39 }
 0x170   :  { %358 = vrot.lane.b32.xlu0 %v1359_v42, %s1404_s9  ;;  %v1801_v42 = vld [vmem:[%s2082_s2 + $0x60] sm:$0xff] }
 0x17d   :  { %263 = vmatmul.bf16.gmra.mxu1 %v1337_v40  ;;  %v377_v40 = vld [vmem:[%s2082_s2 + $0x1d8] sm:$0x7] }
 0x18d   :  { %268 = vmatmul.bf16.gmra.mxu1 %v1338_v41  ;;  %v374_v41 = vld [vmem:[%s2082_s2 + $0x1c0] sm:$0xff] }
 0x19a   :  { %v234_v44 = vpop.f32.mrf.mxu1 }
 0x19b   :  { %v235_v46 = vadd.f32 %v234_v44, %v176_v45  ;;  %v371_v44 = vld [vmem:[%s2082_s2 + $0x1a8] sm:$0xff] }
 0x19d   :  { %v274_v49 = vmax.f32 %v235_v46, 0.0  ;;  %v1510_v46 = vld [vmem:[%s2082_s2 + $0x170] sm:$0xff] }
 0x19e   :  { %657 = vmatpush.msrb.mxu0 %v1510_v46  ;;  %779 = vmatpush.msrb.mxu1 %v1510_v46 }
 0x1a2   :  { %v236_v47 = vpop.f32.mrf.mxu1 }
 0x1a3   :  { %v237_v48 = vadd.f32 %v236_v47, %v176_v45  ;;  %v369_v47 = vld [vmem:[%s2082_s2 + $0x198] sm:$0xff] }
 0x1a5   :  { %v275_v50 = vmax.f32 %v237_v48, 0.0  ;;  %v368_v48 = vld [vmem:[%s2082_s2 + $0x190] sm:$0xff] }
 0x1a7   :  { %v292_v51 = vpack.c.bf16 %v275_v50, %v274_v49  ;;  %v1522_v49 = vld [vmem:[%s2082_s2 + $0x158] sm:$0xff]  ;;  %v366_v50 = vld [vmem:[%s2082_s2 + $0x180] sm:$0xff] }
 0x1a8   :  { %658 = vmatpush.msrb.mxu0 %v1522_v49  ;;  %780 = vmatpush.msrb.mxu1 %v1522_v49 }
 0x1aa   :  { %v239_v52 = vpop.f32.mrf.mxu1 }
 0x1ab   :  { %v240_v53 = vadd.f32 %v239_v52, %v176_v45  ;;  %v1534_v52 = vld [vmem:[%s2082_s2 + $0x140] sm:$0xff] }
 0x1ac   :  { %659 = vmatpush.msrb.mxu0 %v1534_v52  ;;  %781 = vmatpush.msrb.mxu1 %v1534_v52 }
 0x1ad   :  { %v276_v56 = vmax.f32 %v240_v53, 0.0  ;;  %v1542_v53 = vld [vmem:[%s2082_s2 + $0x128] sm:$0xff] }
 0x1ae   :  { %660 = vmatpush.msrb.mxu0 %v1542_v53  ;;  %782 = vmatpush.msrb.mxu1 %v1542_v53 }
 0x1b2   :  { %v241_v54 = vpop.f32.mrf.mxu1 }
 0x1b3   :  { %v242_v55 = vadd.f32 %v241_v54, %v176_v45  ;;  %v1549_v54 = vld [vmem:[%s2082_s2 + $0x110] sm:$0xff] }
 0x1b4   :  { %661 = vmatpush.msrb.mxu0 %v1549_v54  ;;  %783 = vmatpush.msrb.mxu1 %v1549_v54 }
 0x1b5   :  { %v277_v57 = vmax.f32 %v242_v55, 0.0 }
 0x1b7   :  { %v293_v58 = vpack.c.bf16 %v277_v57, %v276_v56 }
 0x1ba   :  { %v244_v59 = vpop.f32.mrf.mxu1 }
 0x1bb   :  { %v245_v60 = vadd.f32 %v244_v59, %v176_v45  ;;  %v373_v59 = vld [vmem:[%s2082_s2 + $0x1b8] sm:$0xff] }
 0x1bd   :  { %v278_v63 = vmax.f32 %v245_v60, 0.0  ;;  %v1567_v60 = vld [vmem:[%s2082_s2 + $0xf8] sm:$0xff] }
 0x1be   :  { %662 = vmatpush.msrb.mxu0 %v1567_v60  ;;  %784 = vmatpush.msrb.mxu1 %v1567_v60 }
 0x1c2   :  { %v246_v61 = vpop.f32.mrf.mxu1 }
 0x1c3   :  { %v247_v62 = vadd.f32 %v246_v61, %v176_v45  ;;  %v370_v61 = vld [vmem:[%s2082_s2 + $0x1a0] sm:$0xff] }
 0x1c5   :  { %v279_v0 = vmax.f32 %v247_v62, 0.0  ;;  %v1576_v62 = vld [vmem:[%s2082_s2 + $0xe0] sm:$0xff] }
 0x1c6   :  { %663 = vmatpush.msrb.mxu0 %v1576_v62  ;;  %785 = vmatpush.msrb.mxu1 %v1576_v62 }
 0x1c7   :  { %v294_v1 = vpack.c.bf16 %v279_v0, %v278_v63  ;;  %v367_v63 = vld [vmem:[%s2082_s2 + $0x188] sm:$0xff] }
 0x1c8   :  { %v1587_v0 = vld [vmem:[%s2082_s2 + $0xc8] sm:$0xff] }
 0x1c9   :  { %664 = vmatpush.msrb.mxu0 %v1587_v0  ;;  %786 = vmatpush.msrb.mxu1 %v1587_v0 }
 0x1ca   :  { %v249_v2 = vpop.f32.mrf.mxu1 }
 0x1cb   :  { %v250_v3 = vadd.f32 %v249_v2, %v176_v45  ;;  %v1604_v2 = vld [vmem:[%s2082_s2 + $0x98] sm:$0xff] }
 0x1cd   :  { %v280_v6 = vmax.f32 %v250_v3, 0.0  ;;  %v1612_v3 = vld [vmem:[%s2082_s2 + $0x80] sm:$0xff] }
 0x1d2   :  { %v251_v4 = vpop.f32.mrf.mxu1 }
 0x1d3   :  { %v252_v5 = vadd.f32 %v251_v4, %v176_v45  ;;  %v1620_v4 = vld [vmem:[%s2082_s2 + $0x68] sm:$0xff] }
 0x1d5   :  { %v281_v7 = vmax.f32 %v252_v5, 0.0  ;;  %v1628_v5 = vld [vmem:[%s2082_s2 + $0x50] sm:$0xff] }
 0x1d7   :  { %v295_v8 = vpack.c.bf16 %v281_v7, %v280_v6  ;;  %v1636_v6 = vld [vmem:[%s2082_s2 + $0x38] sm:$0xff]  ;;  %v1644_v7 = vld [vmem:[%s2082_s2 + $0x20] sm:$0xff] }
 0x1da   :  { %v254_v9 = vpop.f32.mrf.mxu1 }
 0x1db   :  { %v255_v31 = vadd.f32 %v254_v9, %v176_v45  ;;  %v322_v9 = vld [vmem:[%s2080_s1 + $0x18] sm:$0x1] }
 0x1dd   :  { %v282_v35 = vmax.f32 %v255_v31, 0.0  ;;  %v1730_v31 = vld [vmem:[%s2082_s2 + $0x130] sm:$0xff] }
 0x1e2   :  { %v256_v10 = vpop.f32.mrf.mxu1 }
 0x1e3   :  { %v257_v28 = vadd.f32 %v256_v10, %v176_v45  ;;  %v323_v10 = vunpack.c.l.bf16 %v322_v9  ;;  %v1240_v9 = vld [vmem:[%s2082_s2 + $0x1e0] ss:$8 sm:$0x7] }
 0x1e5   :  { %v283_v33 = vmax.f32 %v257_v28, 0.0  ;;  %v1712_v28 = vld [vmem:[%s2082_s2 + $0x108] sm:$0xff] }
 0x1e7   :  { %v296_v36 = vpack.c.bf16 %v283_v33, %v282_v35  ;;  %v1744_v33 = vld [vmem:[%s2082_s2 + $0x118] sm:$0xff]  ;;  %v1758_v35 = vld [vmem:[%s2082_s2 + $0x100] sm:$0xff] }
 0x1ea   :  { %v259_v11 = vpop.f32.mrf.mxu1 }
 0x1eb   :  { %v260_v26 = vadd.f32 %v259_v11, %v176_v45  ;;  %v325_v11 = vperm.slane %v323_v10, 0  ;;  %v381_v10 = vperm.slane %v1240_v9, 0 }
 0x1ed   :  { %v284_v32 = vmax.f32 %v260_v26, 0.0 }
 0x1f2   :  { %v261_v12 = vpop.f32.mrf.mxu1 }
 0x1f3   :  { %v262_v23 = vadd.f32 %v261_v12, %v176_v45 }
 0x1f5   :  { %v285_v29 = vmax.f32 %v262_v23, 0.0  ;;  %v1692_v23 = vld [vmem:[%s2082_s2 + $0x160] sm:$0xff] }
 0x1f7   :  { %v297_v34 = vpack.c.bf16 %v285_v29, %v284_v32  ;;  %v1736_v32 = vld [vmem:[%s2082_s2 + $0xd8] sm:$0xff] }
 0x1fa   :  { %v264_v13 = vpop.f32.mrf.mxu1 }
 0x1fb   :  { %v265_v20 = vadd.f32 %v264_v13, %v176_v45  ;;  %v359_v13 = vpop.permute.xlu0 %358 }
 0x1fd   :  { %v286_v27 = vmax.f32 %v265_v20, 0.0 }
 0x202   :  { %v266_v14 = vpop.f32.mrf.mxu1 }
 0x203   :  { %v267_v18 = vadd.f32 %v266_v14, %v176_v45 }
 0x205   :  { %v287_v24 = vmax.f32 %v267_v18, 0.0  ;;  %v1672_v18 = vld [vmem:[%s2082_s2 + $0x150] sm:$0xff] }
 0x207   :  { %v298_v30 = vpack.c.bf16 %v287_v24, %v286_v27  ;;  %v1706_v27 = vld [vmem:[%s2082_s2 + $0x148] sm:$0xff] }
 0x20a   :  { %v269_v15 = vpop.f32.mrf.mxu1 }
 0x20b   :  { %v270_v16 = vadd.f32 %v269_v15, %v176_v45 }
 0x20d   :  { %v288_v21 = vmax.f32 %v270_v16, 0.0  ;;  %v1664_v16 = vld [vmem:[%s2082_s2 + $0x168] sm:$0xff] }
 0x212   :  { %v271_v17 = vpop.f32.mrf.mxu1 }
 0x213   :  { %v272_v19 = vadd.f32 %v271_v17, %v176_v45  ;;  %v372_v45 = vld [vmem:[%s2082_s2 + $0x1b0] sm:$0xff] }
 0x214   :  { %417 = vmatpush.msrb.mxu3 %v372_v45  ;;  %v1823_v45 = vld [vmem:[%s2082_s2 + $0xa0] sm:$0xff] }
 0x215   :  { %v289_v22 = vmax.f32 %v272_v19, 0.0  ;;  %v1678_v19 = vld [vmem:[%s2082_s2 + $0x178] sm:$0xff] }
 0x216   :  { %418 = vmatpush.msrb.mxu3 %v369_v47  ;;  %v1830_v47 = vld [vmem:[%s2082_s2 + $0x30] sm:$0xff] }
 0x217   :  { %v299_v25 = vpack.c.bf16 %v289_v22, %v288_v21  ;;  %v1684_v21 = vld [vmem:[%s2082_s2 + $0x138] sm:$0xff] }
 0x218   :  { %419 = vmatpush.msrb.mxu3 %v366_v50  ;;  %v1843_v50 = vld [vmem:[%s2082_s2 + $0x18] sm:$0xff] }
 0x219   :  { %306 = vmatpush.bf16.msra.mxu2 %v299_v25  ;;  %v1698_v25 = vld [vmem:[%s2082_s2 + $0x120] sm:$0xff] }
 0x21d   :  { %307 = vmatpush.bf16.msra.mxu2 %v298_v30  ;;  %v1724_v30 = vld [vmem:[%s2082_s2 + $0xf0] sm:$0xff] }
 0x221   :  { %308 = vmatpush.bf16.msra.mxu2 %v297_v34  ;;  %v1750_v34 = vld [vmem:[%s2082_s2 + $0xc0] sm:$0xff] }
 0x225   :  { %309 = vmatpush.bf16.msra.mxu2 %v296_v36  ;;  %v1764_v36 = vld [vmem:[%s2082_s2 + $0xa8] sm:$0xff] }
 0x229   :  { %310 = vmatpush.bf16.msra.mxu2 %v295_v8  ;;  %v1652_v8 = vld [vmem:[%s2082_s2 + $0x8] sm:$0xff] }
 0x22d   :  { %311 = vmatpush.bf16.msra.mxu2 %v294_v1  ;;  %v1597_v1 = vld [vmem:[%s2082_s2 + $0xb0] sm:$0xff] }
 0x22e   :  { %665 = vmatpush.msrb.mxu0 %v1597_v1  ;;  %787 = vmatpush.msrb.mxu1 %v1597_v1 }
 0x230   :  { %666 = vmatpush.msrb.mxu0 %v1604_v2  ;;  %788 = vmatpush.msrb.mxu1 %v1604_v2 }
 0x231   :  { %312 = vmatpush.bf16.msra.mxu2 %v293_v58  ;;  %v376_v58 = vld [vmem:[%s2082_s2 + $0x1d0] sm:$0x7] }
 0x232   :  { %667 = vmatpush.msrb.mxu0 %v1612_v3  ;;  %789 = vmatpush.msrb.mxu1 %v1612_v3 }
 0x234   :  { %668 = vmatpush.msrb.mxu0 %v1620_v4  ;;  %790 = vmatpush.msrb.mxu1 %v1620_v4 }
 0x235   :  { %313 = vmatpush.bf16.msra.mxu2 %v292_v51  ;;  %v1360_v51 = vunpack.c.h.bf16 %v1361_v39  ;;  %v1781_v39 = vld [vmem:[%s2082_s2 + $0xe8] sm:$0xff] }
 0x236   :  { %669 = vmatpush.msrb.mxu0 %v1628_v5  ;;  %791 = vmatpush.msrb.mxu1 %v1628_v5 }
 0x237   :  { %360 = vrot.lane.b32.xlu0 %v1360_v51, %s1404_s9  ;;  %v1851_v51 = vld [vmem:[%s2082_s2 + $0x70] sm:$0xff] }
 0x238   :  { %314 = vmatmul.bf16.vlgmr.msra.gmra.mxu2 %v1339_v37  ;;  %670 = vmatpush.msrb.mxu0 %v1636_v6  ;;  %v1405_v37 = vmov 0.0  }
 0x239   :  { %1247 = vmatpush.msk.msrb.mxu2 %vm394_vm2, %v377_v40  ;;  %792 = vmatpush.msrb.mxu1 %v1636_v6  ;;  %v1787_v40 = vld [vmem:[%s2082_s2 + $0x78] sm:$0xff] }
 0x23a   :  { %671 = vmatpush.msrb.mxu0 %v1644_v7 }
 0x23b   :  { %463 = vmatpush.msrb.mxu2 %v374_v41  ;;  %793 = vmatpush.msrb.mxu1 %v1644_v7  ;;  %v1795_v41 = vld [vmem:[%s2082_s2 + $0xd0] sm:$0xff] }
 0x23c   :  { %672 = vmatpush.msrb.mxu0 %v1652_v8 }
 0x23d   :  { %464 = vmatpush.msrb.mxu2 %v371_v44  ;;  %794 = vmatpush.msrb.mxu1 %v1652_v8  ;;  %v1815_v44 = vld [vmem:[%s2082_s2 + $0x48] sm:$0xff] }
 0x23e   :  { %799 = vmatpush.msra.mxu0 %v1678_v19 }
 0x23f   :  { %465 = vmatpush.msrb.mxu2 %v368_v48  ;;  %906 = vmatpush.msra.mxu1 %v1678_v19  ;;  %v1837_v48 = vld [vmem:[%s2082_s2 + $0x88] sm:$0xff] }
 0x240   :  { %800 = vmatpush.msra.mxu0 %v1692_v23 }
 0x241   :  { %550 = vmatpush.msra.mxu2 %v1510_v46  ;;  %907 = vmatpush.msra.mxu1 %v1692_v23 }
 0x242   :  { %801 = vmatpush.msra.mxu0 %v1706_v27 }
 0x243   :  { %551 = vmatpush.msra.mxu2 %v1522_v49  ;;  %908 = vmatpush.msra.mxu1 %v1706_v27 }
 0x244   :  { %802 = vmatpush.msra.mxu0 %v1730_v31 }
 0x245   :  { %552 = vmatpush.msra.mxu2 %v1534_v52  ;;  %909 = vmatpush.msra.mxu1 %v1730_v31 }
 0x246   :  { %803 = vmatpush.msra.mxu0 %v1744_v33 }
 0x247   :  { %553 = vmatpush.msra.mxu2 %v1542_v53  ;;  %910 = vmatpush.msra.mxu1 %v1744_v33 }
 0x248   :  { %804 = vmatpush.msra.mxu0 %v1758_v35 }
 0x249   :  { %554 = vmatpush.msra.mxu2 %v1549_v54  ;;  %911 = vmatpush.msra.mxu1 %v1758_v35 }
 0x24a   :  { %805 = vmatpush.msra.mxu0 %v1781_v39 }
 0x24b   :  { %555 = vmatpush.msra.mxu2 %v1567_v60  ;;  %912 = vmatpush.msra.mxu1 %v1781_v39 }
 0x24c   :  { %806 = vmatpush.msra.mxu0 %v1795_v41 }
 0x24d   :  { %556 = vmatpush.msra.mxu2 %v1576_v62  ;;  %913 = vmatpush.msra.mxu1 %v1795_v41 }
 0x24e   :  { %807 = vmatpush.msra.mxu0 %v1809_v43 }
 0x24f   :  { %557 = vmatpush.msra.mxu2 %v1587_v0  ;;  %914 = vmatpush.msra.mxu1 %v1809_v43 }
 0x250   :  { %808 = vmatpush.msra.mxu0 %v1823_v45 }
 0x251   :  { %558 = vmatpush.msra.mxu2 %v1597_v1  ;;  %915 = vmatpush.msra.mxu1 %v1823_v45 }
 0x252   :  { %809 = vmatpush.msra.mxu0 %v1837_v48 }
 0x253   :  { %559 = vmatpush.msra.mxu2 %v1604_v2  ;;  %916 = vmatpush.msra.mxu1 %v1837_v48 }
 0x254   :  { %810 = vmatpush.msra.mxu0 %v1851_v51 }
 0x255   :  { %560 = vmatpush.msra.mxu2 %v1612_v3  ;;  %917 = vmatpush.msra.mxu1 %v1851_v51 }
 0x257   :  { %561 = vmatpush.msra.mxu2 %v1620_v4 }
 0x259   :  { %562 = vmatpush.msra.mxu2 %v1628_v5 }
 0x25b   :  { %563 = vmatpush.msra.mxu2 %v1636_v6 }
 0x25d   :  { %564 = vmatpush.msra.mxu2 %v1644_v7 }
 0x25f   :  { %565 = vmatpush.msra.mxu2 %v1652_v8 }
 0x2a9   :  { %v361_v24 = vpop.permute.xlu0 %360 }
 0x2bb   :  { %v315_v55 = vpop.f32.mrf.mxu2 }
 0x2c3   :  { %v317_v56 = vpop.f32.mrf.mxu2 }
 0x2c4   :  { %v324_v57 = vpack.c.bf16 %v317_v56, %v315_v55  ;;  %v1857_v55 = vld [vmem:[%s2082_s2] sm:$0xff]  ;;  %v484_v56 = vld [vmem:[%s2082_s2 + $0x58] sm:$0xff] }
 0x2c5   :  { %811 = vmatpush.msra.mxu0 %v484_v56  ;;  %918 = vmatpush.msra.mxu1 %v484_v56 }
 0x2c6   :  { %1239 = vmatmul.msk.bf16.vlgmr.msra.gmra.mxu3 %vm332_vm3, %v324_v57  ;;  %v481_v57 = vld [vmem:[%s2082_s2 + $0x40] sm:$0xff] }
 0x2c7   :  { %1244 = vmatpush.msk.msra.mxu3 %vm394_vm2, %v376_v58  ;;  %812 = vmatpush.msra.mxu0 %v481_v57  ;;  %v478_v58 = vld [vmem:[%s2082_s2 + $0x28] sm:$0xff] }
 0x2c8   :  { %919 = vmatpush.msra.mxu1 %v481_v57 }
 0x2c9   :  { %440 = vmatpush.msra.mxu3 %v373_v59  ;;  %813 = vmatpush.msra.mxu0 %v478_v58  ;;  %v475_v59 = vld [vmem:[%s2082_s2 + $0x10] sm:$0xff] }
 0x2ca   :  { %920 = vmatpush.msra.mxu1 %v478_v58 }
 0x2cb   :  { %441 = vmatpush.msra.mxu3 %v370_v61  ;;  %814 = vmatpush.msra.mxu0 %v475_v59 }
 0x2cc   :  { %921 = vmatpush.msra.mxu1 %v475_v59 }
 0x2cd   :  { %442 = vmatpush.msra.mxu3 %v367_v63 }
 0x349   :  { %v345_v12 = vpop.f32.mrf.mxu3 }
 0x34a   :  { %v346_v14 = vadd.f32 %v345_v12, %v325_v11 }
 0x34c   :  { %v350_v15 = vmax.f32 %v346_v14, 0.0 }
 0x34e   :  { %v364_v17 = vsel %vm332_vm3, %v350_v15, %v359_v13 }
 0x34f   :  { %1242 = vmatmul.msk.f32.vlgmr.msrb.gmra.mxu3 %vm387_vm4, %v364_v17  ;;  %1248 = vmatmul.msk.f32.vlgmr.msrb.gmra.mxu2 %vm387_vm4, %v364_v17 }
 0x350   :  { %530 = vmatpush.msrb.mxu3 %v1664_v16  ;;  %637 = vmatpush.msrb.mxu2 %v1664_v16 }
 0x351   :  { %v347_v20 = vpop.f32.mrf.mxu3 }
 0x352   :  { %v348_v22 = vadd.f32 %v347_v20, %v325_v11  ;;  %531 = vmatpush.msrb.mxu3 %v1672_v18  ;;  %638 = vmatpush.msrb.mxu2 %v1672_v18  ;;  %v383_v11 = vperm.slane %v1240_v9, 2 }
 0x354   :  { %v351_v26 = vmax.f32 %v348_v22, 0.0  ;;  %532 = vmatpush.msrb.mxu3 %v1684_v21  ;;  %639 = vmatpush.msrb.mxu2 %v1684_v21 }
 0x356   :  { %533 = vmatpush.msrb.mxu3 %v1698_v25  ;;  %v365_v29 = vsel %vm332_vm3, %v351_v26, %v361_v24  ;;  %640 = vmatpush.msrb.mxu2 %v1698_v25 }
 0x357   :  { %1243 = vmatmul.msk.f32.gmra.mxu3 %vm387_vm4, %v365_v29  ;;  %1249 = vmatmul.msk.f32.gmra.mxu2 %vm387_vm4, %v365_v29 }
 0x358   :  { %534 = vmatpush.msrb.mxu3 %v1712_v28  ;;  %641 = vmatpush.msrb.mxu2 %v1712_v28 }
 0x35a   :  { %535 = vmatpush.msrb.mxu3 %v1724_v30  ;;  %642 = vmatpush.msrb.mxu2 %v1724_v30 }
 0x35c   :  { %536 = vmatpush.msrb.mxu3 %v1736_v32  ;;  %643 = vmatpush.msrb.mxu2 %v1736_v32 }
 0x35e   :  { %537 = vmatpush.msrb.mxu3 %v1750_v34  ;;  %644 = vmatpush.msrb.mxu2 %v1750_v34 }
 0x35f   :  { %1245 = vmatmul.msk.f32.vlgmr.msra.gmra.mxu3 %vm387_vm4, %v364_v17  ;;  %566 = vmatmul.f32.vlgmr.msra.gmra.mxu2 %v1405_v37  ;;  %v382_v17 = vperm.slane %v1240_v9, 1 }
 0x360   :  { %538 = vmatpush.msrb.mxu3 %v1764_v36  ;;  %645 = vmatpush.msrb.mxu2 %v1764_v36 }
 0x362   :  { %539 = vmatpush.msrb.mxu3 %v1775_v38  ;;  %646 = vmatpush.msrb.mxu2 %v1775_v38 }
 0x364   :  { %540 = vmatpush.msrb.mxu3 %v1787_v40  ;;  %647 = vmatpush.msrb.mxu2 %v1787_v40 }
 0x366   :  { %541 = vmatpush.msrb.mxu3 %v1801_v42  ;;  %648 = vmatpush.msrb.mxu2 %v1801_v42 }
 0x367   :  { %1246 = vmatmul.msk.f32.gmra.mxu3 %vm387_vm4, %v365_v29 }
 0x368   :  { %542 = vmatpush.msrb.mxu3 %v1815_v44  ;;  %649 = vmatpush.msrb.mxu2 %v1815_v44 }
 0x36a   :  { %543 = vmatpush.msrb.mxu3 %v1830_v47  ;;  %650 = vmatpush.msrb.mxu2 %v1830_v47 }
 0x36c   :  { %544 = vmatpush.msrb.mxu3 %v1843_v50  ;;  %651 = vmatpush.msrb.mxu2 %v1843_v50 }
 0x36e   :  { %545 = vmatpush.msrb.mxu3 %v1857_v55  ;;  %652 = vmatpush.msrb.mxu2 %v1857_v55 }
 0x36f   :  { %546 = vmatmul.f32.vlgmr.msrb.gmra.mxu3 %v1405_v37 }
 0x370   :  { %570 = vmatpush.msra.mxu3 %v1678_v19  ;;  %759 = vmatpush.msra.mxu2 %v1664_v16 }
 0x372   :  { %571 = vmatpush.msra.mxu3 %v1692_v23  ;;  %760 = vmatpush.msra.mxu2 %v1672_v18 }
 0x374   :  { %572 = vmatpush.msra.mxu3 %v1706_v27  ;;  %761 = vmatpush.msra.mxu2 %v1684_v21 }
 0x376   :  { %573 = vmatpush.msra.mxu3 %v1730_v31  ;;  %762 = vmatpush.msra.mxu2 %v1698_v25 }
 0x378   :  { %574 = vmatpush.msra.mxu3 %v1744_v33  ;;  %763 = vmatpush.msra.mxu2 %v1712_v28 }
 0x37a   :  { %575 = vmatpush.msra.mxu3 %v1758_v35  ;;  %764 = vmatpush.msra.mxu2 %v1724_v30 }
 0x37c   :  { %576 = vmatpush.msra.mxu3 %v1781_v39  ;;  %765 = vmatpush.msra.mxu2 %v1736_v32 }
 0x37e   :  { %577 = vmatpush.msra.mxu3 %v1795_v41  ;;  %766 = vmatpush.msra.mxu2 %v1750_v34 }
 0x380   :  { %578 = vmatpush.msra.mxu3 %v1809_v43  ;;  %767 = vmatpush.msra.mxu2 %v1764_v36 }
 0x382   :  { %579 = vmatpush.msra.mxu3 %v1823_v45  ;;  %768 = vmatpush.msra.mxu2 %v1775_v38 }
 0x384   :  { %580 = vmatpush.msra.mxu3 %v1837_v48  ;;  %769 = vmatpush.msra.mxu2 %v1787_v40 }
 0x386   :  { %581 = vmatpush.msra.mxu3 %v1851_v51  ;;  %770 = vmatpush.msra.mxu2 %v1801_v42 }
 0x388   :  { %582 = vmatpush.msra.mxu3 %v484_v56  ;;  %771 = vmatpush.msra.mxu2 %v1815_v44 }
 0x38a   :  { %583 = vmatpush.msra.mxu3 %v481_v57  ;;  %772 = vmatpush.msra.mxu2 %v1830_v47 }
 0x38c   :  { %584 = vmatpush.msra.mxu3 %v478_v58  ;;  %773 = vmatpush.msra.mxu2 %v1843_v50 }
 0x38e   :  { %585 = vmatpush.msra.mxu3 %v475_v59  ;;  %774 = vmatpush.msra.mxu2 %v1857_v55 }
 0x38f   :  { %586 = vmatmul.f32.vlgmr.msra.gmra.mxu3 %v1405_v37 }
 0x390   :  { %677 = vmatpush.msrb.mxu3 %v1678_v19 }
 0x392   :  { %678 = vmatpush.msrb.mxu3 %v1692_v23 }
 0x394   :  { %679 = vmatpush.msrb.mxu3 %v1706_v27 }
 0x396   :  { %680 = vmatpush.msrb.mxu3 %v1730_v31 }
 0x398   :  { %681 = vmatpush.msrb.mxu3 %v1744_v33 }
 0x39a   :  { %682 = vmatpush.msrb.mxu3 %v1758_v35 }
 0x39c   :  { %683 = vmatpush.msrb.mxu3 %v1781_v39 }
 0x39e   :  { %684 = vmatpush.msrb.mxu3 %v1795_v41 }
 0x3a0   :  { %685 = vmatpush.msrb.mxu3 %v1809_v43 }
 0x3a2   :  { %686 = vmatpush.msrb.mxu3 %v1823_v45 }
 0x3a4   :  { %687 = vmatpush.msrb.mxu3 %v1837_v48 }
 0x3a6   :  { %688 = vmatpush.msrb.mxu3 %v1851_v51 }
 0x3a8   :  { %689 = vmatpush.msrb.mxu3 %v484_v56 }
 0x3aa   :  { %690 = vmatpush.msrb.mxu3 %v481_v57 }
 0x3ac   :  { %691 = vmatpush.msrb.mxu3 %v478_v58 }
 0x3ae   :  { %692 = vmatpush.msrb.mxu3 %v475_v59 }
 0x3b0   :  { %866 = vmatpush.msra.mxu3 %v1664_v16  ;;  %v1250_v16 = vld [vmem:[%s2082_s2 + $0x1f8] ss:$8 sm:$0x7] }
 0x3b1   :  { %v1954_v27 = vperm.slane %v1250_v16, 0 }
 0x3b2   :  { %867 = vmatpush.msra.mxu3 %v1672_v18  ;;  %v1946_v18 = vperm.slane %v1250_v16, 1 }
 0x3b4   :  { %868 = vmatpush.msra.mxu3 %v1684_v21 }
 0x3b6   :  { %869 = vmatpush.msra.mxu3 %v1698_v25 }
 0x3b8   :  { %870 = vmatpush.msra.mxu3 %v1712_v28 }
 0x3ba   :  { %871 = vmatpush.msra.mxu3 %v1724_v30 }
 0x3bc   :  { %872 = vmatpush.msra.mxu3 %v1736_v32 }
 0x3be   :  { %873 = vmatpush.msra.mxu3 %v1750_v34 }
 0x3c0   :  { %874 = vmatpush.msra.mxu3 %v1764_v36 }
 0x3c2   :  { %875 = vmatpush.msra.mxu3 %v1775_v38 }
 0x3c4   :  { %876 = vmatpush.msra.mxu3 %v1787_v40 }
 0x3c6   :  { %877 = vmatpush.msra.mxu3 %v1801_v42 }
 0x3c8   :  { %878 = vmatpush.msra.mxu3 %v1815_v44  ;;  %v1960_v44 = vperm.slane %v1250_v16, 2 }
 0x3ca   :  { %879 = vmatpush.msra.mxu3 %v1830_v47 }
 0x3cc   :  { %880 = vmatpush.msra.mxu3 %v1843_v50 }
 0x3ce   :  { %881 = vmatpush.msra.mxu3 %v1857_v55 }
 0x3d2   :  { %v421_v61 = vpop.f32.mrf.mxu3  ;;  %v467_v63 = vpop.f32.mrf.mxu2 }
 0x3d3   :  { %v1956_v29 = vadd.f32 %v421_v61, %v381_v10  ;;  %v1963_v61 = vadd.f32 %v467_v63, %v383_v11 }
 0x3da   :  { %v424_v12 = vpop.f32.mrf.mxu3  ;;  %v470_v13 = vpop.f32.mrf.mxu2 }
 0x3db   :  { %v1939_v14 = vadd.f32 %v424_v12, %v381_v10  ;;  %v1941_v15 = vadd.f32 %v470_v13, %v383_v11 }
 0x3e2   :  { %v444_v19 = vpop.f32.mrf.mxu3  ;;  %v567_v20 = vpop.f32.mrf.mxu2 }
 0x3e3   :  { %v1948_v21 = vadd.f32 %v444_v19, %v382_v17  ;;  %v568_v22 = vadd.f32 %v567_v20, %v1946_v18 }
 0x3e5   :  { %v610_v23 = vadd.f32 %v568_v22, %v1948_v21 }
 0x3e7   :  { %v1252_v26 = vmul.f32 -1.442695, %v610_v23 }
 0x3e9   :  { %1364 = vpow2.f32 %v1252_v26 }
 0x3ea   :  { %v447_v24 = vpop.f32.mrf.mxu3 }
 0x3eb   :  { %v1952_v25 = vadd.f32 %v447_v24, %v382_v17 }
 0x3ef   :  { %v1365_v32 = vpop.eup %1364 }
 0x3f0   :  { %v614_v34 = vadd.f32 1.0, %v1365_v32 }
 0x3f2   :  { %v547_v28 = vpop.f32.mrf.mxu3  ;;  %v626_v9 = vand.u32 2147483648, %v614_v34  ;;  %vm620_vm10 = vweird.f32 %v614_v34  ;;  %v624_v12 = vand.u32 2147483647, %v614_v34 }
 0x3f3   :  { %v548_v30 = vadd.f32 %v547_v28, %v1954_v27 }
 0x3f4   :  { %v627_v17 = vor.u32 1.1754944e-38, %v626_v9  ;;  %vm625_vm12 = vcmp.eq.f32.partialorder %v624_v12, 8.507059e+37 }
 0x3f5   :  { %v590_v31 = vadd.f32 %v548_v30, %v1956_v29 }
 0x3f7   :  { %v1251_v33 = vmul.f32 -1.442695, %v590_v31 }
 0x3f9   :  { %1366 = vpow2.f32 %v1251_v33 }
 0x3fa   :  { %1368 = vrcp.f32 %v614_v34 }
 0x3ff   :  { %v1367_v35 = vpop.eup %1366 }
 0x400   :  { %v594_v36 = vadd.f32 1.0, %v1367_v35  ;;  %v1369_v37 = vpop.eup %1368 }
 0x401   :  { %v616_v38 = vmul.f32 %v1369_v37, %v614_v34  ;;  %vm621_vm9 = vweird.f32 %v1369_v37 }
 0x402   :  { %1370 = vrcp.f32 %v594_v36  ;;  %v606_v43 = vand.u32 2147483648, %v594_v36  ;;  %v604_v47 = vand.u32 2147483647, %v594_v36  ;;  %vm600_vm6 = vweird.f32 %v594_v36  ;;  %vm622_vm11 = vmor %vm620_vm10, %vm621_vm9 }
 0x403   :  { %v617_v41 = vsub.f32 1.0, %v616_v38 }
 0x404   :  { %v607_v55 = vor.u32 1.1754944e-38, %v606_v43  ;;  %vm605_vm8 = vcmp.eq.f32.partialorder %v604_v47, 8.507059e+37 }
 0x405   :  { %v618_v48 = vmul.f32 %v1369_v37, %v617_v41 }
 0x407   :  { %v619_v59 = vadd.f32 %v1369_v37, %v618_v48 }
 0x408   :  { %v1371_v39 = vpop.eup %1370 }
 0x409   :  { %v596_v40 = vmul.f32 %v1371_v39, %v594_v36  ;;  %vm601_vm5 = vweird.f32 %v1371_v39  ;;  %v623_v16 = vsel %vm622_vm11, %v1369_v37, %v619_v59 }
 0x40a   :  { %vm602_vm7 = vmor %vm600_vm6, %vm601_vm5  ;;  %v628_v19 = vsel %vm625_vm12, %v627_v17, %v623_v16 }
 0x40b   :  { %v597_v42 = vsub.f32 1.0, %v596_v40  ;;  %v633_v20 = vsub.f32 1.0, %v628_v19  ;;  %v635_v24 = vmul.f32 0.0, %v628_v19 }
 0x40d   :  { %v598_v45 = vmul.f32 %v1371_v39, %v597_v42 }
 0x40f   :  { %v599_v50 = vadd.f32 %v1371_v39, %v598_v45 }
 0x411   :  { %v603_v57 = vsel %vm602_vm7, %v1371_v39, %v599_v50 }
 0x412   :  { %v587_v51 = vpop.f32.mrf.mxu3  ;;  %v608_v58 = vsel %vm605_vm8, %v607_v55, %v603_v57 }
 0x413   :  { %v588_v56 = vadd.f32 %v587_v51, %v1960_v44 }
 0x415   :  { %v630_v10 = vmul.f32 %v608_v58, %v588_v56 }
 0x417   :  { %v631_v13 = vadd.f32 %v630_v10, %v1963_v61 }
 0x419   :  { %1372 = vtanh.f32 %v631_v13 }
 0x41f   :  { %v1373_v22 = vpop.eup %1372 }
 0x420   :  { %v634_v23 = vmul.f32 %v1373_v22, %v633_v20 }
 0x422   :  { %v1966_v26 = vadd.f32 %v635_v24, %v634_v23 }
 0x424   :  { %653 = vmatmul.f32.vlgmr.msrb.gmra.mxu2 %v1966_v26  ;;  %673 = vmatmul.f32.vlgmr.msrb.gmra.mxu0 %v1966_v26  ;;  %v752_v55 = vrot.slane %v1966_v26, 4 }
 0x425   :  { %693 = vmatmul.f32.vlgmr.msrb.gmra.mxu3 %v1966_v26  ;;  %886 = vmatpush.msrb.mxu2 %v1510_v46 }
 0x427   :  { %887 = vmatpush.msrb.mxu2 %v1522_v49 }
 0x429   :  { %888 = vmatpush.msrb.mxu2 %v1534_v52 }
 0x42b   :  { %889 = vmatpush.msrb.mxu2 %v1542_v53 }
 0x42d   :  { %890 = vmatpush.msrb.mxu2 %v1549_v54 }
 0x42f   :  { %891 = vmatpush.msrb.mxu2 %v1567_v60 }
 0x431   :  { %892 = vmatpush.msrb.mxu2 %v1576_v62 }
 0x433   :  { %893 = vmatpush.msrb.mxu2 %v1587_v0 }
 0x435   :  { %894 = vmatpush.msrb.mxu2 %v1597_v1 }
 0x437   :  { %895 = vmatpush.msrb.mxu2 %v1604_v2 }
 0x439   :  { %896 = vmatpush.msrb.mxu2 %v1612_v3 }
 0x43b   :  { %897 = vmatpush.msrb.mxu2 %v1620_v4 }
 0x43d   :  { %898 = vmatpush.msrb.mxu2 %v1628_v5 }
 0x43f   :  { %899 = vmatpush.msrb.mxu2 %v1636_v6 }
 0x441   :  { %900 = vmatpush.msrb.mxu2 %v1644_v7 }
 0x443   :  { %901 = vmatpush.msrb.mxu2 %v1652_v8 }
 0x4a1   :  { %v674_v46 = vpop.f32.mrf.mxu0 }
 0x4a2   :  { %v675_v49 = vadd.f32 %v674_v46, %v1946_v18 }
 0x4a4   :  { %v721_v52 = vrot.slane %v675_v49, 4 }
 0x4a6   :  { %v723_v53 = vadd.f32 %v721_v52, %v1948_v21 }
 0x4a7   :  { %v654_v54 = vpop.f32.mrf.mxu2 }
 0x4a8   :  { %v1254_v60 = vmul.f32 -1.442695, %v723_v53  ;;  %v655_v62 = vadd.f32 %v654_v54, %v1954_v27  ;;  %v694_v28 = vpop.f32.mrf.mxu3 }
 0x4a9   :  { %v695_v32 = vadd.f32 %v694_v28, %v1960_v44 }
 0x4aa   :  { %1374 = vpow2.f32 %v1254_v60  ;;  %v698_v0 = vrot.slane %v655_v62, 4 }
 0x4ab   :  { %v744_v38 = vrot.slane %v695_v32, 4 }
 0x4ac   :  { %v700_v1 = vadd.f32 %v698_v0, %v1956_v29 }
 0x4ae   :  { %v1253_v2 = vmul.f32 -1.442695, %v700_v1 }
 0x4b0   :  { %v1375_v3 = vpop.eup %1374  ;;  %1376 = vpow2.f32 %v1253_v2 }
 0x4b1   :  { %v727_v4 = vadd.f32 1.0, %v1375_v3 }
 0x4b3   :  { %1378 = vrcp.f32 %v727_v4  ;;  %v739_v42 = vand.u32 2147483648, %v727_v4  ;;  %vm733_vm3 = vweird.f32 %v727_v4  ;;  %v737_v43 = vand.u32 2147483647, %v727_v4 }
 0x4b5   :  { %v740_v48 = vor.u32 1.1754944e-38, %v739_v42  ;;  %vm738_vm5 = vcmp.eq.f32.partialorder %v737_v43, 8.507059e+37 }
 0x4b6   :  { %v1377_v5 = vpop.eup %1376 }
 0x4b7   :  { %v704_v6 = vadd.f32 1.0, %v1377_v5 }
 0x4b9   :  { %1380 = vrcp.f32 %v704_v6  ;;  %v1379_v7 = vpop.eup %1378  ;;  %v716_v31 = vand.u32 2147483648, %v704_v6  ;;  %v714_v29 = vand.u32 2147483647, %v704_v6  ;;  %vm710_vm14 = vweird.f32 %v704_v6 }
 0x4ba   :  { %v729_v8 = vmul.f32 %v1379_v7, %v727_v4  ;;  %vm734_vm2 = vweird.f32 %v1379_v7 }
 0x4bb   :  { %v717_v36 = vor.u32 1.1754944e-38, %v716_v31  ;;  %vm715_vm1 = vcmp.eq.f32.partialorder %v714_v29, 8.507059e+37  ;;  %vm735_vm4 = vmor %vm733_vm3, %vm734_vm2 }
 0x4bc   :  { %v730_v21 = vsub.f32 1.0, %v729_v8 }
 0x4be   :  { %v731_v34 = vmul.f32 %v1379_v7, %v730_v21 }
 0x4bf   :  { %v1381_v63 = vpop.eup %1380 }
 0x4c0   :  { %v706_v11 = vmul.f32 %v1381_v63, %v704_v6  ;;  %vm711_vm13 = vweird.f32 %v1381_v63  ;;  %v732_v40 = vadd.f32 %v1379_v7, %v731_v34 }
 0x4c1   :  { %vm712_vm15 = vmor %vm710_vm14, %vm711_vm13 }
 0x4c2   :  { %v707_v30 = vsub.f32 1.0, %v706_v11  ;;  %v736_v47 = vsel %vm735_vm4, %v1379_v7, %v732_v40  ;;  %v1347_v40 = vld [vmem:[%s2080_s1 + $0x50] sm:$0xff] }
 0x4c3   :  { %v741_v50 = vsel %vm738_vm5, %v740_v48, %v736_v47  ;;  %v1345_v48 = vld [vmem:[%s2080_s1 + $0x40] sm:$0xff] }
 0x4c4   :  { %v708_v33 = vmul.f32 %v1381_v63, %v707_v30  ;;  %v749_v51 = vsub.f32 1.0, %v741_v50  ;;  %v754_v58 = vmul.f32 %v752_v55, %v741_v50  ;;  %v1344_v55 = vld [vmem:[%s2080_s1 + $0x38] sm:$0xff] }
 0x4c6   :  { %v709_v35 = vadd.f32 %v1381_v63, %v708_v33 }
 0x4c8   :  { %v713_v37 = vsel %vm712_vm15, %v1381_v63, %v709_v35 }
 0x4c9   :  { %v718_v39 = vsel %vm715_vm1, %v717_v36, %v713_v37 }
 0x4ca   :  { %v746_v41 = vmul.f32 %v744_v38, %v718_v39  ;;  %v1348_v39 = vld [vmem:[%s2080_s1 + $0x58] sm:$0xff] }
 0x4cb   :  { %1055 = vmatpush.bf16.msrb.mxu0 %v1348_v39  ;;  %v1351_v39 = vld [vmem:[%s2080_s1 + $0x78] sm:$0xff] }
 0x4cc   :  { %v747_v45 = vadd.f32 %v746_v41, %v1963_v61  ;;  %v1346_v41 = vld [vmem:[%s2080_s1 + $0x48] sm:$0xff] }
 0x4ce   :  { %1382 = vtanh.f32 %v747_v45 }
 0x4cf   :  { %1056 = vmatpush.bf16.msrb.mxu0 %v1347_v40  ;;  %v1350_v40 = vld [vmem:[%s2080_s1 + $0x70] sm:$0xff] }
 0x4d3   :  { %1057 = vmatpush.bf16.msrb.mxu0 %v1346_v41 }
 0x4d4   :  { %v1383_v56 = vpop.eup %1382 }
 0x4d5   :  { %v750_v57 = vmul.f32 %v1383_v56, %v749_v51 }
 0x4d7   :  { %v1994_v59 = vadd.f32 %v754_v58, %v750_v57  ;;  %1058 = vmatpush.bf16.msrb.mxu0 %v1345_v48 }
 0x4d9   :  { %v757_v9 = vrot.slane %v1994_v59, 4 }
 0x4db   :  { %775 = vmatmul.f32.vlgmr.msra.gmra.mxu2 %v757_v9  ;;  %795 = vmatmul.f32.vlgmr.msrb.gmra.mxu1 %v757_v9 }
 0x4dc   :  { %815 = vmatmul.f32.vlgmr.msra.gmra.mxu0 %v757_v9 }
 0x4dd   :  { %1059 = vmatpush.bf16.msrb.mxu0 %v1344_v55  ;;  %v1087_v55 = vld [vmem:[%s2080_s1 + $0xa8] sm:$0x1] }
 0x558   :  { %v796_v61 = vpop.f32.mrf.mxu1 }
 0x559   :  { %v797_v10 = vadd.f32 %v796_v61, %v1946_v18  ;;  %v816_v4 = vpop.f32.mrf.mxu0 }
 0x55a   :  { %v817_v7 = vadd.f32 %v816_v4, %v1960_v44 }
 0x55b   :  { %v839_v12 = vadd.f32 %v797_v10, %v1952_v25 }
 0x55d   :  { %v1256_v13 = vmul.f32 -1.442695, %v839_v12 }
 0x55e   :  { %v776_v16 = vpop.f32.mrf.mxu2 }
 0x55f   :  { %1384 = vpow2.f32 %v1256_v13  ;;  %v777_v17 = vadd.f32 %v776_v16, %v1954_v27  ;;  %v1356_v13 = vld [vmem:[%s2080_s1 + $0xa0] sm:$0xff]  ;;  %v1355_v16 = vld [vmem:[%s2080_s1 + $0x98] sm:$0xff] }
 0x560   :  { %1139 = vmatpush.bf16.msrb.mxu3 %v1356_v13 }
 0x561   :  { %v819_v19 = vadd.f32 %v777_v17, %v1939_v14 }
 0x563   :  { %v1255_v20 = vmul.f32 -1.442695, %v819_v19 }
 0x564   :  { %1140 = vmatpush.bf16.msrb.mxu3 %v1355_v16 }
 0x565   :  { %v1385_v22 = vpop.eup %1384  ;;  %1386 = vpow2.f32 %v1255_v20 }
 0x566   :  { %v843_v23 = vadd.f32 1.0, %v1385_v22 }
 0x568   :  { %1388 = vrcp.f32 %v843_v23  ;;  %v855_v21 = vand.u32 2147483648, %v843_v23  ;;  %vm849_vm11 = vweird.f32 %v843_v23  ;;  %v853_v30 = vand.u32 2147483647, %v843_v23 }
 0x56a   :  { %v856_v33 = vor.u32 1.1754944e-38, %v855_v21  ;;  %vm854_vm13 = vcmp.eq.f32.partialorder %v853_v30, 8.507059e+37 }
 0x56b   :  { %v1387_v24 = vpop.eup %1386 }
 0x56c   :  { %v823_v46 = vadd.f32 1.0, %v1387_v24 }
 0x56e   :  { %1390 = vrcp.f32 %v823_v46  ;;  %v1389_v49 = vpop.eup %1388  ;;  %v835_v0 = vand.u32 2147483648, %v823_v46  ;;  %v833_v2 = vand.u32 2147483647, %v823_v46  ;;  %vm829_vm7 = vweird.f32 %v823_v46 }
 0x56f   :  { %v845_v52 = vmul.f32 %v1389_v49, %v843_v23  ;;  %vm850_vm10 = vweird.f32 %v1389_v49 }
 0x570   :  { %v836_v6 = vor.u32 1.1754944e-38, %v835_v0  ;;  %vm834_vm9 = vcmp.eq.f32.partialorder %v833_v2, 8.507059e+37  ;;  %vm851_vm12 = vmor %vm849_vm11, %vm850_vm10 }
 0x571   :  { %v846_v60 = vsub.f32 1.0, %v845_v52 }
 0x573   :  { %v847_v3 = vmul.f32 %v1389_v49, %v846_v60 }
 0x574   :  { %v1391_v53 = vpop.eup %1390 }
 0x575   :  { %v825_v54 = vmul.f32 %v1391_v53, %v823_v46  ;;  %vm830_vm6 = vweird.f32 %v1391_v53  ;;  %v848_v11 = vadd.f32 %v1389_v49, %v847_v3  ;;  %v1354_v46 = vld [vmem:[%s2080_s1 + $0x90] sm:$0xff] }
 0x576   :  { %vm831_vm8 = vmor %vm829_vm7, %vm830_vm6  ;;  %1141 = vmatpush.bf16.msrb.mxu3 %v1354_v46 }
 0x577   :  { %v826_v62 = vsub.f32 1.0, %v825_v54  ;;  %v852_v32 = vsel %vm851_vm12, %v1389_v49, %v848_v11 }
 0x578   :  { %v857_v29 = vsel %vm854_vm13, %v856_v33, %v852_v32 }
 0x579   :  { %v827_v1 = vmul.f32 %v1391_v53, %v826_v62  ;;  %v862_v34 = vsub.f32 1.0, %v857_v29  ;;  %v864_v37 = vmul.f32 %v857_v29, %v757_v9 }
 0x57b   :  { %v828_v5 = vadd.f32 %v1391_v53, %v827_v1  ;;  %v1353_v1 = vld [vmem:[%s2080_s1 + $0x88] sm:$0xff] }
 0x57c   :  { %1142 = vmatpush.bf16.msrb.mxu3 %v1353_v1 }
 0x57d   :  { %v832_v8 = vsel %vm831_vm8, %v1391_v53, %v828_v5 }
 0x57e   :  { %v837_v63 = vsel %vm834_vm9, %v836_v6, %v832_v8 }
 0x57f   :  { %v859_v28 = vmul.f32 %v837_v63, %v817_v7 }
 0x581   :  { %v860_v31 = vadd.f32 %v859_v28, %v1941_v15 }
 0x583   :  { %1392 = vtanh.f32 %v860_v31 }
 0x589   :  { %v1393_v35 = vpop.eup %1392 }
 0x58a   :  { %v863_v36 = vmul.f32 %v1393_v35, %v862_v34  ;;  %v985_v35 = vsel %vm99_vm0, %v1966_v26, %v1994_v59  ;;  %v1349_v26 = vld [vmem:[%s2080_s1 + $0x68] sm:$0xff]  ;;  %v1003_v59 = vld [vmem:[%s2080_s1 + $0x60] sm:$0x1] }
 0x58c   :  { %v2003_v38 = vadd.f32 %v864_v37, %v863_v36  ;;  %v1352_v37 = vld [vmem:[%s2080_s1 + $0x80] sm:$0xff] }
 0x58d   :  { %1143 = vmatpush.bf16.msrb.mxu3 %v1352_v37 }
 0x58e   :  { %882 = vmatmul.f32.vlgmr.msra.gmra.mxu3 %v2003_v38  ;;  %902 = vmatmul.f32.vlgmr.msrb.gmra.mxu2 %v2003_v38  ;;  %v981_v31 = vrot.slane %v2003_v38, 4 }
 0x58f   :  { %922 = vmatmul.f32.vlgmr.msra.gmra.mxu1 %v2003_v38 }
 0x591   :  { %1144 = vmatpush.bf16.msrb.mxu3 %v1351_v39 }
 0x595   :  { %1145 = vmatpush.bf16.msrb.mxu3 %v1350_v40 }
 0x599   :  { %1146 = vmatpush.bf16.msrb.mxu3 %v1349_v26 }
 0x60c   :  { %v923_v22 = vpop.f32.mrf.mxu1 }
 0x60d   :  { %v924_v53 = vadd.f32 %v923_v22, %v1960_v44 }
 0x60f   :  { %v973_v3 = vrot.slane %v924_v53, 4 }
 0x611   :  { %v883_v42 = vpop.f32.mrf.mxu3  ;;  %v903_v43 = vpop.f32.mrf.mxu2 }
 0x612   :  { %v884_v45 = vadd.f32 %v883_v42, %v1954_v27  ;;  %v904_v47 = vadd.f32 %v903_v43, %v1946_v18  ;;  %v1343_v18 = vld [vmem:[%s2080_s1 + $0x30] sm:$0xff]  ;;  %v1342_v27 = vld [vmem:[%s2080_s1 + $0x28] sm:$0xff] }
 0x613   :  { %1060 = vmatpush.bf16.msrb.mxu0 %v1343_v18 }
 0x614   :  { %v927_v50 = vrot.slane %v884_v45, 4  ;;  %v950_v51 = vrot.slane %v904_v47, 4 }
 0x616   :  { %v929_v56 = vadd.f32 %v927_v50, %v1939_v14  ;;  %v952_v57 = vadd.f32 %v950_v51, %v1952_v25  ;;  %v1341_v14 = vld [vmem:[%s2080_s1 + $0x20] sm:$0xff] }
 0x617   :  { %1061 = vmatpush.bf16.msrb.mxu0 %v1342_v27 }
 0x618   :  { %v1257_v58 = vmul.f32 -1.442695, %v929_v56  ;;  %v1258_v9 = vmul.f32 -1.442695, %v952_v57  ;;  %v1088_v56 = vunpack.c.l.bf16 %v1087_v55 }
 0x61a   :  { %1394 = vpow2.f32 %v1257_v58  ;;  %v1090_v57 = vperm.slane %v1088_v56, 0 }
 0x61b   :  { %1396 = vpow2.f32 %v1258_v9  ;;  %1062 = vmatpush.bf16.msrb.mxu0 %v1341_v14 }
 0x620   :  { %v1395_v61 = vpop.eup %1394 }
 0x621   :  { %v1397_v25 = vpop.eup %1396  ;;  %v933_v10 = vadd.f32 1.0, %v1395_v61 }
 0x622   :  { %v956_v12 = vadd.f32 1.0, %v1397_v25 }
 0x623   :  { %1398 = vrcp.f32 %v933_v10  ;;  %v945_v49 = vand.u32 2147483648, %v933_v10  ;;  %v943_v60 = vand.u32 2147483647, %v933_v10  ;;  %vm939_vm15 = vweird.f32 %v933_v10 }
 0x624   :  { %1400 = vrcp.f32 %v956_v12  ;;  %v968_v7 = vand.u32 2147483648, %v956_v12  ;;  %vm962_vm4 = vweird.f32 %v956_v12  ;;  %v966_v8 = vand.u32 2147483647, %v956_v12 }
 0x625   :  { %v946_v2 = vor.u32 1.1754944e-38, %v945_v49  ;;  %vm944_vm2 = vcmp.eq.f32.partialorder %v943_v60, 8.507059e+37 }
 0x626   :  { %v969_v21 = vor.u32 1.1754944e-38, %v968_v7  ;;  %vm967_vm6 = vcmp.eq.f32.partialorder %v966_v8, 8.507059e+37 }
 0x629   :  { %v1399_v17 = vpop.eup %1398 }
 0x62a   :  { %v1401_v19 = vpop.eup %1400  ;;  %v935_v20 = vmul.f32 %v1399_v17, %v933_v10  ;;  %vm940_vm14 = vweird.f32 %v1399_v17 }
 0x62b   :  { %v958_v23 = vmul.f32 %v1401_v19, %v956_v12  ;;  %vm941_vm1 = vmor %vm939_vm15, %vm940_vm14  ;;  %vm963_vm3 = vweird.f32 %v1401_v19 }
 0x62c   :  { %v936_v24 = vsub.f32 1.0, %v935_v20  ;;  %vm964_vm5 = vmor %vm962_vm4, %vm963_vm3 }
 0x62d   :  { %v959_v52 = vsub.f32 1.0, %v958_v23 }
 0x62e   :  { %v937_v54 = vmul.f32 %v1399_v17, %v936_v24 }
 0x62f   :  { %v960_v62 = vmul.f32 %v1401_v19, %v959_v52 }
 0x630   :  { %v938_v0 = vadd.f32 %v1399_v17, %v937_v54 }
 0x631   :  { %v961_v6 = vadd.f32 %v1401_v19, %v960_v62 }
 0x632   :  { %v942_v4 = vsel %vm941_vm1, %v1399_v17, %v938_v0 }
 0x633   :  { %v947_v5 = vsel %vm944_vm2, %v946_v2, %v942_v4  ;;  %v965_v11 = vsel %vm964_vm5, %v1401_v19, %v961_v6 }
 0x634   :  { %v975_v44 = vmul.f32 %v973_v3, %v947_v5  ;;  %v970_v28 = vsel %vm967_vm6, %v969_v21, %v965_v11 }
 0x635   :  { %v978_v30 = vsub.f32 1.0, %v970_v28  ;;  %v983_v29 = vmul.f32 %v981_v31, %v970_v28 }
 0x636   :  { %v976_v63 = vadd.f32 %v975_v44, %v1941_v15 }
 0x638   :  { %1402 = vtanh.f32 %v976_v63 }
 0x63e   :  { %v1403_v32 = vpop.eup %1402 }
 0x63f   :  { %v979_v33 = vmul.f32 %v1403_v32, %v978_v30 }
 0x641   :  { %v984_v34 = vadd.f32 %v983_v29, %v979_v33 }
 0x643   :  { %v986_v36 = vsel %vm99_vm0, %v2003_v38, %v984_v34  ;;  %v1004_v38 = vunpack.c.l.bf16 %v1003_v59 }
 0x644   :  { %v1005_v15 = vpack.c.bf16 %v986_v36, %v985_v35 }
 0x645   :  { %v1006_v42 = vperm.slane %v1004_v38, 0 }
 0x646   :  { %1063 = vmatmul.bf16.vlgmr.msrb.gmra.mxu0 %v1005_v15 }
 0x6c3   :  { %v1064_v41 = vpop.f32.mrf.mxu0 }
 0x6c4   :  { %v1065_v43 = vadd.f32 %v1064_v41, %v1006_v42 }
 0x6c6   :  { %v1069_v48 = vmax.f32 %v1065_v43, 0.0 }
 0x6cb   :  { %v1066_v45 = vpop.f32.mrf.mxu0 }
 0x6cc   :  { %v1067_v47 = vadd.f32 %v1066_v45, %v1006_v42 }
 0x6ce   :  { %v1070_v50 = vmax.f32 %v1067_v47, 0.0 }
 0x6d0   :  { %v1089_v51 = vpack.c.bf16 %v1070_v50, %v1069_v48 }
 0x6d2   :  { %1147 = vmatmul.bf16.vlgmr.msrb.gmra.mxu3 %v1089_v51 }
 0x755   :  { %v1148_v58 = vpop.f32.mrf.mxu3 }
 0x756   :  { %v1149_v9 = vadd.f32 %v1148_v58, %v1090_v57 }
 0x758   :  { %1153 = vst [vmem:[%s2083_s3] sm:$0xff] %v1149_v9 }
 0x75d   :  { %v1150_v18 = vpop.f32.mrf.mxu3 }
 0x75e   :  { %v1151_v27 = vadd.f32 %v1150_v18, %v1090_v57 }
 0x760   :  { %1154 = vst [vmem:[%s2083_s3 + $0x8] sm:$0xff] %v1151_v27 }

</bundles_post_ra>
